<compile_context>
chip_gen: v6e
topology: v6e:2x2x1
jax: 0.10.0
libtpu: 0.0.40
codegen_flags: <defaults>
</compile_context>

<pallas_src>
import functools
import math

import jax
import jax.numpy as jnp
from jax import lax
from jax.experimental import pallas as pl
from jax.experimental.pallas import tpu as pltpu


def _round_up(x, m):
    return ((x + m - 1) // m) * m


# ---------------------------------------------------------------------------
# Kernel
# ---------------------------------------------------------------------------
def _stack_kernel(x_ref, *refs, n_blocks, n_hidden_layers, in_size, use_fori):
    """One batch tile through the whole stack of GenericBlocks.

    The running state concatenates [backcast | forecast]; the fused
    (negated-backcast) head matmul lets every block reduce to `state += heads`.
    """
    if n_hidden_layers > 0:
        (w0_ref, b0_ref, wh_ref, bh_ref,
         w1_ref, b1_ref, w2_ref, b2_ref, bc_ref, fc_ref) = refs
    else:
        (w0_ref, b0_ref,
         w1_ref, b1_ref, w2_ref, b2_ref, bc_ref, fc_ref) = refs
        wh_ref = bh_ref = None

    state = x_ref[...].astype(jnp.float32)          # (Bt, in_size + output)

    def block_step(blk, state):
        # First FC + ReLU (norm=None -> identity).  Weights are bf16; f32 acc.
        a = state.astype(jnp.bfloat16)
        h = jnp.dot(a, w0_ref[blk],
                    preferred_element_type=jnp.float32) + b0_ref[blk]
        h = jnp.maximum(h, 0.0)
        # Remaining hidden FC + ReLU layers (short, statically unrolled).
        for l in range(n_hidden_layers):
            idx = blk * n_hidden_layers + l
            h = jnp.dot(h.astype(jnp.bfloat16), wh_ref[idx],
                        preferred_element_type=jnp.float32) + bh_ref[idx]
            h = jnp.maximum(h, 0.0)
        # TODO(synk): nn.Dropout after every layer is identity in inference
        # mode; training-mode Bernoulli masking (pltpu.prng_random_bits) and
        # the norm='batch'/'instance' branches are intentionally omitted.

        # Fused heads: one dot producing [theta_b | theta_f], one block-diagonal
        # dot producing [-backcast_head | +forecast_head].
        th = jnp.dot(h.astype(jnp.bfloat16), w1_ref[blk],
                     preferred_element_type=jnp.float32) + b1_ref[blk]
        heads = jnp.dot(th.astype(jnp.bfloat16), w2_ref[blk],
                        preferred_element_type=jnp.float32) + b2_ref[blk]
        return state + heads

    if use_fori:
        # Many blocks: real loop bounds code size / vreg live ranges.
        state = lax.fori_loop(0, n_blocks, block_step, state)
    else:
        for blk in range(n_blocks):
            state = block_step(blk, state)

    bc_ref[...] = state[:, :in_size].astype(bc_ref.dtype)
    fc_ref[...] = state[:, in_size:].astype(fc_ref.dtype)


# ---------------------------------------------------------------------------
# Wrapper
# ---------------------------------------------------------------------------
def _prep_weights(params):
    """Pad / fuse / cast the per-block parameter stacks for the kernel."""
    (w0, b0, wh, bh, wb1, bb1, wb2, bb2, wf1, bf1, wf2, bf2) = params
    nb, in_size, hidden = w0.shape
    theta = wb1.shape[-1]
    output_size = wf2.shape[-1]
    n_hidden_layers = 0 if wh is None else wh.shape[1]

    hp = _round_up(hidden, 128)          # lane-dense hidden activations
    tp = _round_up(theta, 128)           # lane-dense theta, aligned fused halves
    s = in_size + output_size            # fused [backcast | forecast] width

    f32 = jnp.float32
    # First FC: rows extended over the fused state (forecast rows are zero).
    w0e = jnp.zeros((nb, s, hp), f32).at[:, :in_size, :hidden].set(w0)
    b0e = jnp.zeros((nb, 1, hp), f32).at[:, :, :hidden].set(b0)

    if n_hidden_layers > 0:
        whe = jnp.zeros((nb, n_hidden_layers, hp, hp), f32)
        whe = whe.at[:, :, :hidden, :hidden].set(wh)
        bhe = jnp.zeros((nb, n_hidden_layers, 1, hp), f32)
        bhe = bhe.at[:, :, :, :hidden].set(bh)
        # Flatten (block, layer) so the kernel only ever indexes one leading axis.
        whe = whe.reshape(nb * n_hidden_layers, hp, hp)
        bhe = bhe.reshape(nb * n_hidden_layers, 1, hp)
    else:
        whe = bhe = None

    # Fused head stage 1: hidden -> [theta_b | theta_f] (theta-padded halves).
    w1e = jnp.zeros((nb, hp, 2 * tp), f32)
    w1e = w1e.at[:, :hidden, :theta].set(wb1).at[:, :hidden, tp:tp + theta].set(wf1)
    b1e = jnp.zeros((nb, 1, 2 * tp), f32)
    b1e = b1e.at[:, :, :theta].set(bb1).at[:, :, tp:tp + theta].set(bf1)

    # Fused head stage 2 (block-diagonal).  Backcast columns NEGATED so the
    # kernel can accumulate `state += heads` (backcast -= head, forecast += head).
    w2e = jnp.zeros((nb, 2 * tp, s), f32)
    w2e = w2e.at[:, :theta, :in_size].set(-wb2).at[:, tp:tp + theta, in_size:].set(wf2)
    b2e = jnp.zeros((nb, 1, s), f32)
    b2e = b2e.at[:, :, :in_size].set(-bb2).at[:, :, in_size:].set(bf2)

    bf16 = lambda a: a.astype(jnp.bfloat16)      # matmul operands; biases stay f32
    weights = [bf16(w0e), b0e]
    if whe is not None:
        weights += [bf16(whe), bhe]
    weights += [bf16(w1e), b1e, bf16(w2e), b2e]
    dims = dict(in_size=in_size, n_blocks=nb, n_hidden_layers=n_hidden_layers,
                output_size=output_size, state_cols=s)
    return weights, dims


def _choose_batch_tile(n, state_cols, in_size, output_size, weight_bytes):
    """Largest batch tile that (a) gives >= 2 grid steps so v7x's two
    TensorCores can each take tiles, and (b) fits a conservative VMEM budget
    sized for v7x's 64 MiB physical VMEM (generous on v5e/v6e)."""
    budget = 40 * 1024 * 1024
    for t in (1024, 512, 256, 128, 64, 32, 16, 8):
        if t != 8 and pl.cdiv(n, t) < 2:
            continue
        stream_in = 2 * t * state_cols * 2                    # bf16, double-buffered
        stream_out = 2 * t * (in_size + output_size) * 4      # f32, double-buffered
        if weight_bytes + stream_in + stream_out <= budget:
            return t
    return 8


def generic_stack_forward(x3d, params):
    """Forward pass of GenericStack.  x3d: (n, h, f) float32.
    Returns (backcast (n, h, f) float32, forecast (n, output_size) float32)."""
    n, hh, ff = x3d.shape
    in_size = hh * ff

    weights, dims = _prep_weights(params)
    assert dims["in_size"] == in_size
    output_size = dims["output_size"]
    s = dims["state_cols"]

    weight_bytes = sum(int(a.size) * a.dtype.itemsize for a in weights)
    # TODO(synk): when the stacked per-block weights exceed the VMEM budget
    # (very large hidden / many blocks), switch to streaming per-block weights
    # over an extra "arbitrary" grid axis with a VMEM-carried state instead of
    # the all-resident layout below.
    b_tile = _choose_batch_tile(n, s, in_size, output_size, weight_bytes)
    n_pad = _round_up(n, b_tile)
    grid = (n_pad // b_tile,)

    # Streamed input: bf16 (halves HBM traffic), batch-padded to the tile and
    # column-padded with `output_size` zero forecast columns so the fused
    # [backcast | forecast] state loads in one piece.
    x_pad = jnp.zeros((n_pad, s), jnp.bfloat16)
    x_pad = x_pad.at[:n, :in_size].set(x3d.reshape(n, in_size).astype(jnp.bfloat16))

    kernel = functools.partial(
        _stack_kernel,
        n_blocks=dims["n_blocks"],
        n_hidden_layers=dims["n_hidden_layers"],
        in_size=in_size,
        use_fori=dims["n_blocks"] > 4)

    # Explicit VMEM cap: never above v7x's 64 MiB physical VMEM.
    est = (2 * weight_bytes + 2 * b_tile * s * 2
           + 2 * b_tile * (in_size + output_size) * 4)
    vmem_limit = int(min(64 * 1024 * 1024, max(2 * est, 32 * 1024 * 1024)))

    out_shape = (jax.ShapeDtypeStruct((n_pad, in_size), jnp.float32),
                 jax.ShapeDtypeStruct((n_pad, output_size), jnp.float32))
    out_specs = (pl.BlockSpec((b_tile, in_size), lambda i: (i, 0)),
                 pl.BlockSpec((b_tile, output_size), lambda i: (i, 0)))

    def run(single_buffer_weights):
        if single_buffer_weights:
            # Grid-invariant resident weights: constant index_map + 1 buffer
            # (no reason to pay double-buffer VMEM for invariant operands).
            def w_spec(a):
                return pl.BlockSpec(a.shape, lambda i, nd=a.ndim: (0,) * nd,
                                    pipeline_mode=pl.Buffered(1))
        else:
            def w_spec(a):
                return pl.BlockSpec(a.shape, lambda i, nd=a.ndim: (0,) * nd)

        in_specs = [pl.BlockSpec((b_tile, s), lambda i: (i, 0))]
        in_specs += [w_spec(a) for a in weights]
        out = pl.pallas_call(
            kernel,
            out_shape=out_shape,
            grid=grid,
            in_specs=in_specs,
            out_specs=out_specs,
            compiler_params=pltpu.CompilerParams(
                dimension_semantics=("parallel",),
                vmem_limit_bytes=vmem_limit),
        )(x_pad, *weights)
        return jax.block_until_ready(out)

    try:
        backcast_p, forecast_p = run(True)
    except Exception:
        # Fallback for environments that reject single-buffered invariant operands.
        backcast_p, forecast_p = run(False)

    return backcast_p[:n].reshape(n, hh, ff), forecast_p[:n]


# ---------------------------------------------------------------------------
# PyTorch-like parameter init and pure-JAX reference
# ---------------------------------------------------------------------------
def init_params(key, *, in_size, hidden, theta, layers, n_blocks, output_size):
    """Uniform(+-1/sqrt(fan_in)) init; weights pre-transposed to (fan_in, fan_out)."""
    def lin(k, fan_in, fan_out):
        kw, kb = jax.random.split(k)
        bound = 1.0 / math.sqrt(fan_in)
        w = jax.random.uniform(kw, (fan_in, fan_out), jnp.float32, -bound, bound)
        b = jax.random.uniform(kb, (1, fan_out), jnp.float32, -bound, bound)
        return w, b

    block_keys = jax.random.split(key, n_blocks)
    w0s, b0s, whs, bhs = [], [], [], []
    wb1s, bb1s, wb2s, bb2s = [], [], [], []
    wf1s, bf1s, wf2s, bf2s = [], [], [], []
    for bk in block_keys:
        ks = jax.random.split(bk, layers + 4)
        w, b = lin(ks[0], in_size, hidden); w0s.append(w); b0s.append(b)
        wh_l, bh_l = [], []
        for li in range(layers - 1):
            w, b = lin(ks[1 + li], hidden, hidden)
            wh_l.append(w); bh_l.append(b)
        if wh_l:
            whs.append(jnp.stack(wh_l)); bhs.append(jnp.stack(bh_l))
        w, b = lin(ks[layers + 0], hidden, theta);      wb1s.append(w); bb1s.append(b)
        w, b = lin(ks[layers + 1], theta, in_size);     wb2s.append(w); bb2s.append(b)
        w, b = lin(ks[layers + 2], hidden, theta);      wf1s.append(w); bf1s.append(b)
        w, b = lin(ks[layers + 3], theta, output_size); wf2s.append(w); bf2s.append(b)

    st = jnp.stack
    wh = st(whs) if whs else None
    bh = st(bhs) if bhs else None
    return (st(w0s), st(b0s), wh, bh,
            st(wb1s), st(bb1s), st(wb2s), st(bb2s),
            st(wf1s), st(bf1s), st(wf2s), st(bf2s))


def reference_stack(x3d, params):
    (w0, b0, wh, bh, wb1, bb1, wb2, bb2, wf1, bf1, wf2, bf2) = params
    n = x3d.shape[0]
    n_blocks = w0.shape[0]
    n_hidden = 0 if wh is None else wh.shape[1]
    output_size = wf2.shape[-1]
    backcast = x3d.reshape(n, -1)
    forecast = jnp.zeros((n, output_size), jnp.float32)
    for blk in range(n_blocks):
        h = jnp.maximum(backcast @ w0[blk] + b0[blk], 0.0)
        for l in range(n_hidden):
            h = jnp.maximum(h @ wh[blk, l] + bh[blk, l], 0.0)
        bc = (h @ wb1[blk] + bb1[blk]) @ wb2[blk] + bb2[blk]
        fc = (h @ wf1[blk] + bf1[blk]) @ wf2[blk] + bf2[blk]
        backcast = backcast - bc
        forecast = forecast + fc
    return backcast.reshape(x3d.shape), forecast


# ---------------------------------------------------------------------------
# Self-test
# ---------------------------------------------------------------------------
if __name__ == "__main__":
    master_key = jax.random.PRNGKey(0)
    key_a, key_b = jax.random.split(master_key)

    def check(key, input_size, hidden, theta, layers, n_blocks, output_size, batch):
        in_size = input_size[0] * input_size[1]
        kx, kp = jax.random.split(key)
        x3d = jax.random.normal(kx, (batch,) + input_size, dtype=jnp.float32)
        params = init_params(kp, in_size=in_size, hidden=hidden, theta=theta,
                             layers=layers, n_blocks=n_blocks,
                             output_size=output_size)
        backcast, forecast = generic_stack_forward(x3d, params)
        backcast = jax.block_until_ready(backcast)
        forecast = jax.block_until_ready(forecast)
        ref_bc, ref_fc = reference_stack(x3d, params)
        assert backcast.shape == x3d.shape, backcast.shape
        assert forecast.shape == (batch, output_size), forecast.shape
        # bf16 weight/activation streaming -> tolerance looser than pure f32.
        assert jnp.allclose(backcast, ref_bc, atol=3e-2, rtol=3e-2)
        assert jnp.allclose(forecast, ref_fc, atol=3e-2, rtol=3e-2)

    # Small config (unrolled block loop, two batch tiles of 8).
    check(key_a, (8, 4), 32, 8, 3, 2, 1, 16)
    # Larger config exercising the fori_loop block path, hidden/theta padding,
    # batch padding (20 -> 32) and output_size > 1.
    check(key_b, (12, 3), 64, 16, 2, 5, 4, 20)

    print("KERNEL_OK")
</pallas_src>

<mosaic_0001>
module attributes {stable_mosaic.version = 11 : i64} {
  func.func @_stack_kernel(%arg0: i32, %arg1: memref<8x33xbf16, #tpu.memory_space<vmem>>, %arg2: memref<2x33x128xbf16, #tpu.memory_space<vmem>>, %arg3: memref<2x1x128xf32, #tpu.memory_space<vmem>>, %arg4: memref<4x128x128xbf16, #tpu.memory_space<vmem>>, %arg5: memref<4x1x128xf32, #tpu.memory_space<vmem>>, %arg6: memref<2x128x256xbf16, #tpu.memory_space<vmem>>, %arg7: memref<2x1x256xf32, #tpu.memory_space<vmem>>, %arg8: memref<2x256x33xbf16, #tpu.memory_space<vmem>>, %arg9: memref<2x1x33xf32, #tpu.memory_space<vmem>>, %arg10: memref<8x32xf32, #tpu.memory_space<vmem>>, %arg11: memref<8x1xf32, #tpu.memory_space<vmem>>) attributes {dimension_semantics = [#tpu.dimension_semantics<parallel>], iteration_bounds = array<i64: 2>, scalar_prefetch = 0 : i64, scratch_operands = 0 : i64, tpu.core_type = #tpu.core_type<tc>, window_params = [{transform_indices = @transform_0, window_bounds = array<i64: 8, 33>}, {pipeline_mode = #tpu.pipeline_mode<synchronous>, transform_indices = @transform_1, window_bounds = array<i64: 2, 33, 128>}, {pipeline_mode = #tpu.pipeline_mode<synchronous>, transform_indices = @transform_2, window_bounds = array<i64: 2, 1, 128>}, {pipeline_mode = #tpu.pipeline_mode<synchronous>, transform_indices = @transform_3, window_bounds = array<i64: 4, 128, 128>}, {pipeline_mode = #tpu.pipeline_mode<synchronous>, transform_indices = @transform_4, window_bounds = array<i64: 4, 1, 128>}, {pipeline_mode = #tpu.pipeline_mode<synchronous>, transform_indices = @transform_5, window_bounds = array<i64: 2, 128, 256>}, {pipeline_mode = #tpu.pipeline_mode<synchronous>, transform_indices = @transform_6, window_bounds = array<i64: 2, 1, 256>}, {pipeline_mode = #tpu.pipeline_mode<synchronous>, transform_indices = @transform_7, window_bounds = array<i64: 2, 256, 33>}, {pipeline_mode = #tpu.pipeline_mode<synchronous>, transform_indices = @transform_8, window_bounds = array<i64: 2, 1, 33>}, {transform_indices = @transform_9, window_bounds = array<i64: 8, 32>}, {transform_indices = @transform_10, window_bounds = array<i64: 8, 1>}]} {
    %c0 = arith.constant 0 : index
    %c0_0 = arith.constant 0 : index
    %0 = vector.load %arg1[%c0, %c0_0] : memref<8x33xbf16, #tpu.memory_space<vmem>>, vector<8x33xbf16>
    %1 = arith.extf %0 : vector<8x33xbf16> to vector<8x33xf32>
    %2 = arith.truncf %1 : vector<8x33xf32> to vector<8x33xbf16>
    %c0_1 = arith.constant 0 : index
    %c0_2 = arith.constant 0 : index
    %c0_3 = arith.constant 0 : index
    %3 = vector.load %arg2[%c0_1, %c0_2, %c0_3] : memref<2x33x128xbf16, #tpu.memory_space<vmem>>, vector<1x33x128xbf16>
    %4 = vector.shape_cast %3 : vector<1x33x128xbf16> to vector<33x128xbf16>
    %cst = arith.constant dense<0.000000e+00> : vector<8x128xf32>
    %5 = tpu.matmul %2, %4, %cst {dimension_numbers = #tpu.dot_dimension_numbers<[1], [0], [0], [1], [0, 0, 1, 1], [], []>} : vector<8x33xbf16>, vector<33x128xbf16>, vector<8x128xf32> -> vector<8x128xf32>
    %c0_4 = arith.constant 0 : index
    %c0_5 = arith.constant 0 : index
    %c0_6 = arith.constant 0 : index
    %6 = vector.load %arg3[%c0_4, %c0_5, %c0_6] : memref<2x1x128xf32, #tpu.memory_space<vmem>>, vector<1x1x128xf32>
    %7 = vector.shape_cast %6 : vector<1x1x128xf32> to vector<1x128xf32>
    %8 = vector.broadcast %7 : vector<1x128xf32> to vector<8x128xf32>
    %9 = arith.addf %5, %8 : vector<8x128xf32>
    %cst_7 = arith.constant 0.000000e+00 : f32
    %10 = vector.broadcast %cst_7 : f32 to vector<8x128xf32>
    %11 = arith.maximumf %9, %10 : vector<8x128xf32>
    %12 = arith.truncf %11 : vector<8x128xf32> to vector<8x128xbf16>
    %c0_8 = arith.constant 0 : index
    %c0_9 = arith.constant 0 : index
    %c0_10 = arith.constant 0 : index
    %13 = vector.load %arg4[%c0_8, %c0_9, %c0_10] : memref<4x128x128xbf16, #tpu.memory_space<vmem>>, vector<1x128x128xbf16>
    %14 = vector.shape_cast %13 : vector<1x128x128xbf16> to vector<128x128xbf16>
    %cst_11 = arith.constant dense<0.000000e+00> : vector<8x128xf32>
    %15 = tpu.matmul %12, %14, %cst_11 {dimension_numbers = #tpu.dot_dimension_numbers<[1], [0], [0], [1], [0, 0, 1, 1], [], []>} : vector<8x128xbf16>, vector<128x128xbf16>, vector<8x128xf32> -> vector<8x128xf32>
    %c0_12 = arith.constant 0 : index
    %c0_13 = arith.constant 0 : index
    %c0_14 = arith.constant 0 : index
    %16 = vector.load %arg5[%c0_12, %c0_13, %c0_14] : memref<4x1x128xf32, #tpu.memory_space<vmem>>, vector<1x1x128xf32>
    %17 = vector.shape_cast %16 : vector<1x1x128xf32> to vector<1x128xf32>
    %18 = vector.broadcast %17 : vector<1x128xf32> to vector<8x128xf32>
    %19 = arith.addf %15, %18 : vector<8x128xf32>
    %cst_15 = arith.constant 0.000000e+00 : f32
    %20 = vector.broadcast %cst_15 : f32 to vector<8x128xf32>
    %21 = arith.maximumf %19, %20 : vector<8x128xf32>
    %22 = arith.truncf %21 : vector<8x128xf32> to vector<8x128xbf16>
    %c1 = arith.constant 1 : index
    %c0_16 = arith.constant 0 : index
    %c0_17 = arith.constant 0 : index
    %23 = vector.load %arg4[%c1, %c0_16, %c0_17] : memref<4x128x128xbf16, #tpu.memory_space<vmem>>, vector<1x128x128xbf16>
    %24 = vector.shape_cast %23 : vector<1x128x128xbf16> to vector<128x128xbf16>
    %cst_18 = arith.constant dense<0.000000e+00> : vector<8x128xf32>
    %25 = tpu.matmul %22, %24, %cst_18 {dimension_numbers = #tpu.dot_dimension_numbers<[1], [0], [0], [1], [0, 0, 1, 1], [], []>} : vector<8x128xbf16>, vector<128x128xbf16>, vector<8x128xf32> -> vector<8x128xf32>
    %c1_19 = arith.constant 1 : index
    %c0_20 = arith.constant 0 : index
    %c0_21 = arith.constant 0 : index
    %26 = vector.load %arg5[%c1_19, %c0_20, %c0_21] : memref<4x1x128xf32, #tpu.memory_space<vmem>>, vector<1x1x128xf32>
    %27 = vector.shape_cast %26 : vector<1x1x128xf32> to vector<1x128xf32>
    %28 = vector.broadcast %27 : vector<1x128xf32> to vector<8x128xf32>
    %29 = arith.addf %25, %28 : vector<8x128xf32>
    %cst_22 = arith.constant 0.000000e+00 : f32
    %30 = vector.broadcast %cst_22 : f32 to vector<8x128xf32>
    %31 = arith.maximumf %29, %30 : vector<8x128xf32>
    %32 = arith.truncf %31 : vector<8x128xf32> to vector<8x128xbf16>
    %c0_23 = arith.constant 0 : index
    %c0_24 = arith.constant 0 : index
    %c0_25 = arith.constant 0 : index
    %33 = vector.load %arg6[%c0_23, %c0_24, %c0_25] : memref<2x128x256xbf16, #tpu.memory_space<vmem>>, vector<1x128x256xbf16>
    %34 = vector.shape_cast %33 : vector<1x128x256xbf16> to vector<128x256xbf16>
    %cst_26 = arith.constant dense<0.000000e+00> : vector<8x256xf32>
    %35 = tpu.matmul %32, %34, %cst_26 {dimension_numbers = #tpu.dot_dimension_numbers<[1], [0], [0], [1], [0, 0, 1, 1], [], []>} : vector<8x128xbf16>, vector<128x256xbf16>, vector<8x256xf32> -> vector<8x256xf32>
    %c0_27 = arith.constant 0 : index
    %c0_28 = arith.constant 0 : index
    %c0_29 = arith.constant 0 : index
    %36 = vector.load %arg7[%c0_27, %c0_28, %c0_29] : memref<2x1x256xf32, #tpu.memory_space<vmem>>, vector<1x1x256xf32>
    %37 = vector.shape_cast %36 : vector<1x1x256xf32> to vector<1x256xf32>
    %38 = vector.broadcast %37 : vector<1x256xf32> to vector<8x256xf32>
    %39 = arith.addf %35, %38 : vector<8x256xf32>
    %40 = arith.truncf %39 : vector<8x256xf32> to vector<8x256xbf16>
    %c0_30 = arith.constant 0 : index
    %c0_31 = arith.constant 0 : index
    %c0_32 = arith.constant 0 : index
    %41 = vector.load %arg8[%c0_30, %c0_31, %c0_32] : memref<2x256x33xbf16, #tpu.memory_space<vmem>>, vector<1x256x33xbf16>
    %42 = vector.shape_cast %41 : vector<1x256x33xbf16> to vector<256x33xbf16>
    %cst_33 = arith.constant dense<0.000000e+00> : vector<8x33xf32>
    %43 = tpu.matmul %40, %42, %cst_33 {dimension_numbers = #tpu.dot_dimension_numbers<[1], [0], [0], [1], [0, 0, 1, 1], [], []>} : vector<8x256xbf16>, vector<256x33xbf16>, vector<8x33xf32> -> vector<8x33xf32>
    %c0_34 = arith.constant 0 : index
    %c0_35 = arith.constant 0 : index
    %c0_36 = arith.constant 0 : index
    %44 = vector.load %arg9[%c0_34, %c0_35, %c0_36] : memref<2x1x33xf32, #tpu.memory_space<vmem>>, vector<1x1x33xf32>
    %45 = vector.shape_cast %44 : vector<1x1x33xf32> to vector<1x33xf32>
    %46 = vector.broadcast %45 : vector<1x33xf32> to vector<8x33xf32>
    %47 = arith.addf %43, %46 : vector<8x33xf32>
    %48 = arith.addf %1, %47 : vector<8x33xf32>
    %49 = arith.truncf %48 : vector<8x33xf32> to vector<8x33xbf16>
    %c1_37 = arith.constant 1 : index
    %c0_38 = arith.constant 0 : index
    %c0_39 = arith.constant 0 : index
    %50 = vector.load %arg2[%c1_37, %c0_38, %c0_39] : memref<2x33x128xbf16, #tpu.memory_space<vmem>>, vector<1x33x128xbf16>
    %51 = vector.shape_cast %50 : vector<1x33x128xbf16> to vector<33x128xbf16>
    %cst_40 = arith.constant dense<0.000000e+00> : vector<8x128xf32>
    %52 = tpu.matmul %49, %51, %cst_40 {dimension_numbers = #tpu.dot_dimension_numbers<[1], [0], [0], [1], [0, 0, 1, 1], [], []>} : vector<8x33xbf16>, vector<33x128xbf16>, vector<8x128xf32> -> vector<8x128xf32>
    %c1_41 = arith.constant 1 : index
    %c0_42 = arith.constant 0 : index
    %c0_43 = arith.constant 0 : index
    %53 = vector.load %arg3[%c1_41, %c0_42, %c0_43] : memref<2x1x128xf32, #tpu.memory_space<vmem>>, vector<1x1x128xf32>
    %54 = vector.shape_cast %53 : vector<1x1x128xf32> to vector<1x128xf32>
    %55 = vector.broadcast %54 : vector<1x128xf32> to vector<8x128xf32>
    %56 = arith.addf %52, %55 : vector<8x128xf32>
    %cst_44 = arith.constant 0.000000e+00 : f32
    %57 = vector.broadcast %cst_44 : f32 to vector<8x128xf32>
    %58 = arith.maximumf %56, %57 : vector<8x128xf32>
    %59 = arith.truncf %58 : vector<8x128xf32> to vector<8x128xbf16>
    %c2 = arith.constant 2 : index
    %c0_45 = arith.constant 0 : index
    %c0_46 = arith.constant 0 : index
    %60 = vector.load %arg4[%c2, %c0_45, %c0_46] : memref<4x128x128xbf16, #tpu.memory_space<vmem>>, vector<1x128x128xbf16>
    %61 = vector.shape_cast %60 : vector<1x128x128xbf16> to vector<128x128xbf16>
    %cst_47 = arith.constant dense<0.000000e+00> : vector<8x128xf32>
    %62 = tpu.matmul %59, %61, %cst_47 {dimension_numbers = #tpu.dot_dimension_numbers<[1], [0], [0], [1], [0, 0, 1, 1], [], []>} : vector<8x128xbf16>, vector<128x128xbf16>, vector<8x128xf32> -> vector<8x128xf32>
    %c2_48 = arith.constant 2 : index
    %c0_49 = arith.constant 0 : index
    %c0_50 = arith.constant 0 : index
    %63 = vector.load %arg5[%c2_48, %c0_49, %c0_50] : memref<4x1x128xf32, #tpu.memory_space<vmem>>, vector<1x1x128xf32>
    %64 = vector.shape_cast %63 : vector<1x1x128xf32> to vector<1x128xf32>
    %65 = vector.broadcast %64 : vector<1x128xf32> to vector<8x128xf32>
    %66 = arith.addf %62, %65 : vector<8x128xf32>
    %cst_51 = arith.constant 0.000000e+00 : f32
    %67 = vector.broadcast %cst_51 : f32 to vector<8x128xf32>
    %68 = arith.maximumf %66, %67 : vector<8x128xf32>
    %69 = arith.truncf %68 : vector<8x128xf32> to vector<8x128xbf16>
    %c3 = arith.constant 3 : index
    %c0_52 = arith.constant 0 : index
    %c0_53 = arith.constant 0 : index
    %70 = vector.load %arg4[%c3, %c0_52, %c0_53] : memref<4x128x128xbf16, #tpu.memory_space<vmem>>, vector<1x128x128xbf16>
    %71 = vector.shape_cast %70 : vector<1x128x128xbf16> to vector<128x128xbf16>
    %cst_54 = arith.constant dense<0.000000e+00> : vector<8x128xf32>
    %72 = tpu.matmul %69, %71, %cst_54 {dimension_numbers = #tpu.dot_dimension_numbers<[1], [0], [0], [1], [0, 0, 1, 1], [], []>} : vector<8x128xbf16>, vector<128x128xbf16>, vector<8x128xf32> -> vector<8x128xf32>
    %c3_55 = arith.constant 3 : index
    %c0_56 = arith.constant 0 : index
    %c0_57 = arith.constant 0 : index
    %73 = vector.load %arg5[%c3_55, %c0_56, %c0_57] : memref<4x1x128xf32, #tpu.memory_space<vmem>>, vector<1x1x128xf32>
    %74 = vector.shape_cast %73 : vector<1x1x128xf32> to vector<1x128xf32>
    %75 = vector.broadcast %74 : vector<1x128xf32> to vector<8x128xf32>
    %76 = arith.addf %72, %75 : vector<8x128xf32>
    %cst_58 = arith.constant 0.000000e+00 : f32
    %77 = vector.broadcast %cst_58 : f32 to vector<8x128xf32>
    %78 = arith.maximumf %76, %77 : vector<8x128xf32>
    %79 = arith.truncf %78 : vector<8x128xf32> to vector<8x128xbf16>
    %c1_59 = arith.constant 1 : index
    %c0_60 = arith.constant 0 : index
    %c0_61 = arith.constant 0 : index
    %80 = vector.load %arg6[%c1_59, %c0_60, %c0_61] : memref<2x128x256xbf16, #tpu.memory_space<vmem>>, vector<1x128x256xbf16>
    %81 = vector.shape_cast %80 : vector<1x128x256xbf16> to vector<128x256xbf16>
    %cst_62 = arith.constant dense<0.000000e+00> : vector<8x256xf32>
    %82 = tpu.matmul %79, %81, %cst_62 {dimension_numbers = #tpu.dot_dimension_numbers<[1], [0], [0], [1], [0, 0, 1, 1], [], []>} : vector<8x128xbf16>, vector<128x256xbf16>, vector<8x256xf32> -> vector<8x256xf32>
    %c1_63 = arith.constant 1 : index
    %c0_64 = arith.constant 0 : index
    %c0_65 = arith.constant 0 : index
    %83 = vector.load %arg7[%c1_63, %c0_64, %c0_65] : memref<2x1x256xf32, #tpu.memory_space<vmem>>, vector<1x1x256xf32>
    %84 = vector.shape_cast %83 : vector<1x1x256xf32> to vector<1x256xf32>
    %85 = vector.broadcast %84 : vector<1x256xf32> to vector<8x256xf32>
    %86 = arith.addf %82, %85 : vector<8x256xf32>
    %87 = arith.truncf %86 : vector<8x256xf32> to vector<8x256xbf16>
    %c1_66 = arith.constant 1 : index
    %c0_67 = arith.constant 0 : index
    %c0_68 = arith.constant 0 : index
    %88 = vector.load %arg8[%c1_66, %c0_67, %c0_68] : memref<2x256x33xbf16, #tpu.memory_space<vmem>>, vector<1x256x33xbf16>
    %89 = vector.shape_cast %88 : vector<1x256x33xbf16> to vector<256x33xbf16>
    %cst_69 = arith.constant dense<0.000000e+00> : vector<8x33xf32>
    %90 = tpu.matmul %87, %89, %cst_69 {dimension_numbers = #tpu.dot_dimension_numbers<[1], [0], [0], [1], [0, 0, 1, 1], [], []>} : vector<8x256xbf16>, vector<256x33xbf16>, vector<8x33xf32> -> vector<8x33xf32>
    %c1_70 = arith.constant 1 : index
    %c0_71 = arith.constant 0 : index
    %c0_72 = arith.constant 0 : index
    %91 = vector.load %arg9[%c1_70, %c0_71, %c0_72] : memref<2x1x33xf32, #tpu.memory_space<vmem>>, vector<1x1x33xf32>
    %92 = vector.shape_cast %91 : vector<1x1x33xf32> to vector<1x33xf32>
    %93 = vector.broadcast %92 : vector<1x33xf32> to vector<8x33xf32>
    %94 = arith.addf %90, %93 : vector<8x33xf32>
    %95 = arith.addf %48, %94 : vector<8x33xf32>
    %96 = vector.extract_strided_slice %95 {offsets = [0, 0], sizes = [8, 32], strides = [1, 1]} : vector<8x33xf32> to vector<8x32xf32>
    %c0_73 = arith.constant 0 : index
    %c0_74 = arith.constant 0 : index
    %97 = vector.load %arg10[%c0_73, %c0_74] : memref<8x32xf32, #tpu.memory_space<vmem>>, vector<8x32xf32>
    tpu.vector_store %arg10[%c0_73, %c0_74], %96 {strides = array<i32>} : memref<8x32xf32, #tpu.memory_space<vmem>>, vector<8x32xf32>,
    %98 = vector.extract_strided_slice %95 {offsets = [0, 32], sizes = [8, 1], strides = [1, 1]} : vector<8x33xf32> to vector<8x1xf32>
    %c0_75 = arith.constant 0 : index
    %c0_76 = arith.constant 0 : index
    %99 = vector.load %arg11[%c0_75, %c0_76] : memref<8x1xf32, #tpu.memory_space<vmem>>, vector<8x1xf32>
    tpu.vector_store %arg11[%c0_75, %c0_76], %98 {strides = array<i32>} : memref<8x1xf32, #tpu.memory_space<vmem>>, vector<8x1xf32>,
    return
  }
  func.func @transform_0(%arg0: i32) -> (i32, i32) {
    %c0_i32 = arith.constant 0 : i32
    %c0_i32_0 = arith.constant 0 : i32
    return %arg0, %c0_i32 : i32, i32
  }
  func.func @transform_1(%arg0: i32) -> (i32, i32, i32) {
    %c0_i32 = arith.constant 0 : i32
    %c0_i32_0 = arith.constant 0 : i32
    %c0_i32_1 = arith.constant 0 : i32
    %c0_i32_2 = arith.constant 0 : i32
    return %c0_i32, %c0_i32_0, %c0_i32_1 : i32, i32, i32
  }
  func.func @transform_2(%arg0: i32) -> (i32, i32, i32) {
    %c0_i32 = arith.constant 0 : i32
    %c0_i32_0 = arith.constant 0 : i32
    %c0_i32_1 = arith.constant 0 : i32
    %c0_i32_2 = arith.constant 0 : i32
    return %c0_i32, %c0_i32_0, %c0_i32_1 : i32, i32, i32
  }
  func.func @transform_3(%arg0: i32) -> (i32, i32, i32) {
    %c0_i32 = arith.constant 0 : i32
    %c0_i32_0 = arith.constant 0 : i32
    %c0_i32_1 = arith.constant 0 : i32
    %c0_i32_2 = arith.constant 0 : i32
    return %c0_i32, %c0_i32_0, %c0_i32_1 : i32, i32, i32
  }
  func.func @transform_4(%arg0: i32) -> (i32, i32, i32) {
    %c0_i32 = arith.constant 0 : i32
    %c0_i32_0 = arith.constant 0 : i32
    %c0_i32_1 = arith.constant 0 : i32
    %c0_i32_2 = arith.constant 0 : i32
    return %c0_i32, %c0_i32_0, %c0_i32_1 : i32, i32, i32
  }
  func.func @transform_5(%arg0: i32) -> (i32, i32, i32) {
    %c0_i32 = arith.constant 0 : i32
    %c0_i32_0 = arith.constant 0 : i32
    %c0_i32_1 = arith.constant 0 : i32
    %c0_i32_2 = arith.constant 0 : i32
    return %c0_i32, %c0_i32_0, %c0_i32_1 : i32, i32, i32
  }
  func.func @transform_6(%arg0: i32) -> (i32, i32, i32) {
    %c0_i32 = arith.constant 0 : i32
    %c0_i32_0 = arith.constant 0 : i32
    %c0_i32_1 = arith.constant 0 : i32
    %c0_i32_2 = arith.constant 0 : i32
    return %c0_i32, %c0_i32_0, %c0_i32_1 : i32, i32, i32
  }
  func.func @transform_7(%arg0: i32) -> (i32, i32, i32) {
    %c0_i32 = arith.constant 0 : i32
    %c0_i32_0 = arith.constant 0 : i32
    %c0_i32_1 = arith.constant 0 : i32
    %c0_i32_2 = arith.constant 0 : i32
    return %c0_i32, %c0_i32_0, %c0_i32_1 : i32, i32, i32
  }
  func.func @transform_8(%arg0: i32) -> (i32, i32, i32) {
    %c0_i32 = arith.constant 0 : i32
    %c0_i32_0 = arith.constant 0 : i32
    %c0_i32_1 = arith.constant 0 : i32
    %c0_i32_2 = arith.constant 0 : i32
    return %c0_i32, %c0_i32_0, %c0_i32_1 : i32, i32, i32
  }
  func.func @transform_9(%arg0: i32) -> (i32, i32) {
    %c0_i32 = arith.constant 0 : i32
    %c0_i32_0 = arith.constant 0 : i32
    return %arg0, %c0_i32 : i32, i32
  }
  func.func @transform_10(%arg0: i32) -> (i32, i32) {
    %c0_i32 = arith.constant 0 : i32
    %c0_i32_0 = arith.constant 0 : i32
    return %arg0, %c0_i32 : i32, i32
  }
}

module attributes {stable_mosaic.version = 11 : i64} {
  func.func @_stack_kernel(%arg0: i32, %arg1: memref<8x33xbf16, #tpu.memory_space<vmem>>, %arg2: memref<2x33x128xbf16, #tpu.memory_space<vmem>>, %arg3: memref<2x1x128xf32, #tpu.memory_space<vmem>>, %arg4: memref<4x128x128xbf16, #tpu.memory_space<vmem>>, %arg5: memref<4x1x128xf32, #tpu.memory_space<vmem>>, %arg6: memref<2x128x256xbf16, #tpu.memory_space<vmem>>, %arg7: memref<2x1x256xf32, #tpu.memory_space<vmem>>, %arg8: memref<2x256x33xbf16, #tpu.memory_space<vmem>>, %arg9: memref<2x1x33xf32, #tpu.memory_space<vmem>>, %arg10: memref<8x32xf32, #tpu.memory_space<vmem>>, %arg11: memref<8x1xf32, #tpu.memory_space<vmem>>) attributes {dimension_semantics = [#tpu.dimension_semantics<parallel>], iteration_bounds = array<i64: 2>, scalar_prefetch = 0 : i64, scratch_operands = 0 : i64, tpu.core_type = #tpu.core_type<tc>, window_params = [{transform_indices = @transform_0, window_bounds = array<i64: 8, 33>}, {pipeline_mode = #tpu.pipeline_mode<synchronous>, transform_indices = @transform_1, window_bounds = array<i64: 2, 33, 128>}, {pipeline_mode = #tpu.pipeline_mode<synchronous>, transform_indices = @transform_2, window_bounds = array<i64: 2, 1, 128>}, {pipeline_mode = #tpu.pipeline_mode<synchronous>, transform_indices = @transform_3, window_bounds = array<i64: 4, 128, 128>}, {pipeline_mode = #tpu.pipeline_mode<synchronous>, transform_indices = @transform_4, window_bounds = array<i64: 4, 1, 128>}, {pipeline_mode = #tpu.pipeline_mode<synchronous>, transform_indices = @transform_5, window_bounds = array<i64: 2, 128, 256>}, {pipeline_mode = #tpu.pipeline_mode<synchronous>, transform_indices = @transform_6, window_bounds = array<i64: 2, 1, 256>}, {pipeline_mode = #tpu.pipeline_mode<synchronous>, transform_indices = @transform_7, window_bounds = array<i64: 2, 256, 33>}, {pipeline_mode = #tpu.pipeline_mode<synchronous>, transform_indices = @transform_8, window_bounds = array<i64: 2, 1, 33>}, {transform_indices = @transform_9, window_bounds = array<i64: 8, 32>}, {transform_indices = @transform_10, window_bounds = array<i64: 8, 1>}]} {
    %c0 = arith.constant 0 : index
    %c0_0 = arith.constant 0 : index
    %0 = vector.load %arg1[%c0, %c0_0] : memref<8x33xbf16, #tpu.memory_space<vmem>>, vector<8x33xbf16>
    %1 = arith.extf %0 : vector<8x33xbf16> to vector<8x33xf32>
    %2 = arith.truncf %1 : vector<8x33xf32> to vector<8x33xbf16>
    %c0_1 = arith.constant 0 : index
    %c0_2 = arith.constant 0 : index
    %c0_3 = arith.constant 0 : index
    %3 = vector.load %arg2[%c0_1, %c0_2, %c0_3] : memref<2x33x128xbf16, #tpu.memory_space<vmem>>, vector<1x33x128xbf16>
    %4 = vector.shape_cast %3 : vector<1x33x128xbf16> to vector<33x128xbf16>
    %cst = arith.constant dense<0.000000e+00> : vector<8x128xf32>
    %5 = tpu.matmul %2, %4, %cst {dimension_numbers = #tpu.dot_dimension_numbers<[1], [0], [0], [1], [0, 0, 1, 1], [], []>} : vector<8x33xbf16>, vector<33x128xbf16>, vector<8x128xf32> -> vector<8x128xf32>
    %c0_4 = arith.constant 0 : index
    %c0_5 = arith.constant 0 : index
    %c0_6 = arith.constant 0 : index
    %6 = vector.load %arg3[%c0_4, %c0_5, %c0_6] : memref<2x1x128xf32, #tpu.memory_space<vmem>>, vector<1x1x128xf32>
    %7 = vector.shape_cast %6 : vector<1x1x128xf32> to vector<1x128xf32>
    %8 = vector.broadcast %7 : vector<1x128xf32> to vector<8x128xf32>
    %9 = arith.addf %5, %8 : vector<8x128xf32>
    %cst_7 = arith.constant 0.000000e+00 : f32
    %10 = vector.broadcast %cst_7 : f32 to vector<8x128xf32>
    %11 = arith.maximumf %9, %10 : vector<8x128xf32>
    %12 = arith.truncf %11 : vector<8x128xf32> to vector<8x128xbf16>
    %c0_8 = arith.constant 0 : index
    %c0_9 = arith.constant 0 : index
    %c0_10 = arith.constant 0 : index
    %13 = vector.load %arg4[%c0_8, %c0_9, %c0_10] : memref<4x128x128xbf16, #tpu.memory_space<vmem>>, vector<1x128x128xbf16>
    %14 = vector.shape_cast %13 : vector<1x128x128xbf16> to vector<128x128xbf16>
    %cst_11 = arith.constant dense<0.000000e+00> : vector<8x128xf32>
    %15 = tpu.matmul %12, %14, %cst_11 {dimension_numbers = #tpu.dot_dimension_numbers<[1], [0], [0], [1], [0, 0, 1, 1], [], []>} : vector<8x128xbf16>, vector<128x128xbf16>, vector<8x128xf32> -> vector<8x128xf32>
    %c0_12 = arith.constant 0 : index
    %c0_13 = arith.constant 0 : index
    %c0_14 = arith.constant 0 : index
    %16 = vector.load %arg5[%c0_12, %c0_13, %c0_14] : memref<4x1x128xf32, #tpu.memory_space<vmem>>, vector<1x1x128xf32>
    %17 = vector.shape_cast %16 : vector<1x1x128xf32> to vector<1x128xf32>
    %18 = vector.broadcast %17 : vector<1x128xf32> to vector<8x128xf32>
    %19 = arith.addf %15, %18 : vector<8x128xf32>
    %cst_15 = arith.constant 0.000000e+00 : f32
    %20 = vector.broadcast %cst_15 : f32 to vector<8x128xf32>
    %21 = arith.maximumf %19, %20 : vector<8x128xf32>
    %22 = arith.truncf %21 : vector<8x128xf32> to vector<8x128xbf16>
    %c1 = arith.constant 1 : index
    %c0_16 = arith.constant 0 : index
    %c0_17 = arith.constant 0 : index
    %23 = vector.load %arg4[%c1, %c0_16, %c0_17] : memref<4x128x128xbf16, #tpu.memory_space<vmem>>, vector<1x128x128xbf16>
    %24 = vector.shape_cast %23 : vector<1x128x128xbf16> to vector<128x128xbf16>
    %cst_18 = arith.constant dense<0.000000e+00> : vector<8x128xf32>
    %25 = tpu.matmul %22, %24, %cst_18 {dimension_numbers = #tpu.dot_dimension_numbers<[1], [0], [0], [1], [0, 0, 1, 1], [], []>} : vector<8x128xbf16>, vector<128x128xbf16>, vector<8x128xf32> -> vector<8x128xf32>
    %c1_19 = arith.constant 1 : index
    %c0_20 = arith.constant 0 : index
    %c0_21 = arith.constant 0 : index
    %26 = vector.load %arg5[%c1_19, %c0_20, %c0_21] : memref<4x1x128xf32, #tpu.memory_space<vmem>>, vector<1x1x128xf32>
    %27 = vector.shape_cast %26 : vector<1x1x128xf32> to vector<1x128xf32>
    %28 = vector.broadcast %27 : vector<1x128xf32> to vector<8x128xf32>
    %29 = arith.addf %25, %28 : vector<8x128xf32>
    %cst_22 = arith.constant 0.000000e+00 : f32
    %30 = vector.broadcast %cst_22 : f32 to vector<8x128xf32>
    %31 = arith.maximumf %29, %30 : vector<8x128xf32>
    %32 = arith.truncf %31 : vector<8x128xf32> to vector<8x128xbf16>
    %c0_23 = arith.constant 0 : index
    %c0_24 = arith.constant 0 : index
    %c0_25 = arith.constant 0 : index
    %33 = vector.load %arg6[%c0_23, %c0_24, %c0_25] : memref<2x128x256xbf16, #tpu.memory_space<vmem>>, vector<1x128x256xbf16>
    %34 = vector.shape_cast %33 : vector<1x128x256xbf16> to vector<128x256xbf16>
    %cst_26 = arith.constant dense<0.000000e+00> : vector<8x256xf32>
    %35 = tpu.matmul %32, %34, %cst_26 {dimension_numbers = #tpu.dot_dimension_numbers<[1], [0], [0], [1], [0, 0, 1, 1], [], []>} : vector<8x128xbf16>, vector<128x256xbf16>, vector<8x256xf32> -> vector<8x256xf32>
    %c0_27 = arith.constant 0 : index
    %c0_28 = arith.constant 0 : index
    %c0_29 = arith.constant 0 : index
    %36 = vector.load %arg7[%c0_27, %c0_28, %c0_29] : memref<2x1x256xf32, #tpu.memory_space<vmem>>, vector<1x1x256xf32>
    %37 = vector.shape_cast %36 : vector<1x1x256xf32> to vector<1x256xf32>
    %38 = vector.broadcast %37 : vector<1x256xf32> to vector<8x256xf32>
    %39 = arith.addf %35, %38 : vector<8x256xf32>
    %40 = arith.truncf %39 : vector<8x256xf32> to vector<8x256xbf16>
    %c0_30 = arith.constant 0 : index
    %c0_31 = arith.constant 0 : index
    %c0_32 = arith.constant 0 : index
    %41 = vector.load %arg8[%c0_30, %c0_31, %c0_32] : memref<2x256x33xbf16, #tpu.memory_space<vmem>>, vector<1x256x33xbf16>
    %42 = vector.shape_cast %41 : vector<1x256x33xbf16> to vector<256x33xbf16>
    %cst_33 = arith.constant dense<0.000000e+00> : vector<8x33xf32>
    %43 = tpu.matmul %40, %42, %cst_33 {dimension_numbers = #tpu.dot_dimension_numbers<[1], [0], [0], [1], [0, 0, 1, 1], [], []>} : vector<8x256xbf16>, vector<256x33xbf16>, vector<8x33xf32> -> vector<8x33xf32>
    %c0_34 = arith.constant 0 : index
    %c0_35 = arith.constant 0 : index
    %c0_36 = arith.constant 0 : index
    %44 = vector.load %arg9[%c0_34, %c0_35, %c0_36] : memref<2x1x33xf32, #tpu.memory_space<vmem>>, vector<1x1x33xf32>
    %45 = vector.shape_cast %44 : vector<1x1x33xf32> to vector<1x33xf32>
    %46 = vector.broadcast %45 : vector<1x33xf32> to vector<8x33xf32>
    %47 = arith.addf %43, %46 : vector<8x33xf32>
    %48 = arith.addf %1, %47 : vector<8x33xf32>
    %49 = arith.truncf %48 : vector<8x33xf32> to vector<8x33xbf16>
    %c1_37 = arith.constant 1 : index
    %c0_38 = arith.constant 0 : index
    %c0_39 = arith.constant 0 : index
    %50 = vector.load %arg2[%c1_37, %c0_38, %c0_39] : memref<2x33x128xbf16, #tpu.memory_space<vmem>>, vector<1x33x128xbf16>
    %51 = vector.shape_cast %50 : vector<1x33x128xbf16> to vector<33x128xbf16>
    %cst_40 = arith.constant dense<0.000000e+00> : vector<8x128xf32>
    %52 = tpu.matmul %49, %51, %cst_40 {dimension_numbers = #tpu.dot_dimension_numbers<[1], [0], [0], [1], [0, 0, 1, 1], [], []>} : vector<8x33xbf16>, vector<33x128xbf16>, vector<8x128xf32> -> vector<8x128xf32>
    %c1_41 = arith.constant 1 : index
    %c0_42 = arith.constant 0 : index
    %c0_43 = arith.constant 0 : index
    %53 = vector.load %arg3[%c1_41, %c0_42, %c0_43] : memref<2x1x128xf32, #tpu.memory_space<vmem>>, vector<1x1x128xf32>
    %54 = vector.shape_cast %53 : vector<1x1x128xf32> to vector<1x128xf32>
    %55 = vector.broadcast %54 : vector<1x128xf32> to vector<8x128xf32>
    %56 = arith.addf %52, %55 : vector<8x128xf32>
    %cst_44 = arith.constant 0.000000e+00 : f32
    %57 = vector.broadcast %cst_44 : f32 to vector<8x128xf32>
    %58 = arith.maximumf %56, %57 : vector<8x128xf32>
    %59 = arith.truncf %58 : vector<8x128xf32> to vector<8x128xbf16>
    %c2 = arith.constant 2 : index
    %c0_45 = arith.constant 0 : index
    %c0_46 = arith.constant 0 : index
    %60 = vector.load %arg4[%c2, %c0_45, %c0_46] : memref<4x128x128xbf16, #tpu.memory_space<vmem>>, vector<1x128x128xbf16>
    %61 = vector.shape_cast %60 : vector<1x128x128xbf16> to vector<128x128xbf16>
    %cst_47 = arith.constant dense<0.000000e+00> : vector<8x128xf32>
    %62 = tpu.matmul %59, %61, %cst_47 {dimension_numbers = #tpu.dot_dimension_numbers<[1], [0], [0], [1], [0, 0, 1, 1], [], []>} : vector<8x128xbf16>, vector<128x128xbf16>, vector<8x128xf32> -> vector<8x128xf32>
    %c2_48 = arith.constant 2 : index
    %c0_49 = arith.constant 0 : index
    %c0_50 = arith.constant 0 : index
    %63 = vector.load %arg5[%c2_48, %c0_49, %c0_50] : memref<4x1x128xf32, #tpu.memory_space<vmem>>, vector<1x1x128xf32>
    %64 = vector.shape_cast %63 : vector<1x1x128xf32> to vector<1x128xf32>
    %65 = vector.broadcast %64 : vector<1x128xf32> to vector<8x128xf32>
    %66 = arith.addf %62, %65 : vector<8x128xf32>
    %cst_51 = arith.constant 0.000000e+00 : f32
    %67 = vector.broadcast %cst_51 : f32 to vector<8x128xf32>
    %68 = arith.maximumf %66, %67 : vector<8x128xf32>
    %69 = arith.truncf %68 : vector<8x128xf32> to vector<8x128xbf16>
    %c3 = arith.constant 3 : index
    %c0_52 = arith.constant 0 : index
    %c0_53 = arith.constant 0 : index
    %70 = vector.load %arg4[%c3, %c0_52, %c0_53] : memref<4x128x128xbf16, #tpu.memory_space<vmem>>, vector<1x128x128xbf16>
    %71 = vector.shape_cast %70 : vector<1x128x128xbf16> to vector<128x128xbf16>
    %cst_54 = arith.constant dense<0.000000e+00> : vector<8x128xf32>
    %72 = tpu.matmul %69, %71, %cst_54 {dimension_numbers = #tpu.dot_dimension_numbers<[1], [0], [0], [1], [0, 0, 1, 1], [], []>} : vector<8x128xbf16>, vector<128x128xbf16>, vector<8x128xf32> -> vector<8x128xf32>
    %c3_55 = arith.constant 3 : index
    %c0_56 = arith.constant 0 : index
    %c0_57 = arith.constant 0 : index
    %73 = vector.load %arg5[%c3_55, %c0_56, %c0_57] : memref<4x1x128xf32, #tpu.memory_space<vmem>>, vector<1x1x128xf32>
    %74 = vector.shape_cast %73 : vector<1x1x128xf32> to vector<1x128xf32>
    %75 = vector.broadcast %74 : vector<1x128xf32> to vector<8x128xf32>
    %76 = arith.addf %72, %75 : vector<8x128xf32>
    %cst_58 = arith.constant 0.000000e+00 : f32
    %77 = vector.broadcast %cst_58 : f32 to vector<8x128xf32>
    %78 = arith.maximumf %76, %77 : vector<8x128xf32>
    %79 = arith.truncf %78 : vector<8x128xf32> to vector<8x128xbf16>
    %c1_59 = arith.constant 1 : index
    %c0_60 = arith.constant 0 : index
    %c0_61 = arith.constant 0 : index
    %80 = vector.load %arg6[%c1_59, %c0_60, %c0_61] : memref<2x128x256xbf16, #tpu.memory_space<vmem>>, vector<1x128x256xbf16>
    %81 = vector.shape_cast %80 : vector<1x128x256xbf16> to vector<128x256xbf16>
    %cst_62 = arith.constant dense<0.000000e+00> : vector<8x256xf32>
    %82 = tpu.matmul %79, %81, %cst_62 {dimension_numbers = #tpu.dot_dimension_numbers<[1], [0], [0], [1], [0, 0, 1, 1], [], []>} : vector<8x128xbf16>, vector<128x256xbf16>, vector<8x256xf32> -> vector<8x256xf32>
    %c1_63 = arith.constant 1 : index
    %c0_64 = arith.constant 0 : index
    %c0_65 = arith.constant 0 : index
    %83 = vector.load %arg7[%c1_63, %c0_64, %c0_65] : memref<2x1x256xf32, #tpu.memory_space<vmem>>, vector<1x1x256xf32>
    %84 = vector.shape_cast %83 : vector<1x1x256xf32> to vector<1x256xf32>
    %85 = vector.broadcast %84 : vector<1x256xf32> to vector<8x256xf32>
    %86 = arith.addf %82, %85 : vector<8x256xf32>
    %87 = arith.truncf %86 : vector<8x256xf32> to vector<8x256xbf16>
    %c1_66 = arith.constant 1 : index
    %c0_67 = arith.constant 0 : index
    %c0_68 = arith.constant 0 : index
    %88 = vector.load %arg8[%c1_66, %c0_67, %c0_68] : memref<2x256x33xbf16, #tpu.memory_space<vmem>>, vector<1x256x33xbf16>
    %89 = vector.shape_cast %88 : vector<1x256x33xbf16> to vector<256x33xbf16>
    %cst_69 = arith.constant dense<0.000000e+00> : vector<8x33xf32>
    %90 = tpu.matmul %87, %89, %cst_69 {dimension_numbers = #tpu.dot_dimension_numbers<[1], [0], [0], [1], [0, 0, 1, 1], [], []>} : vector<8x256xbf16>, vector<256x33xbf16>, vector<8x33xf32> -> vector<8x33xf32>
    %c1_70 = arith.constant 1 : index
    %c0_71 = arith.constant 0 : index
    %c0_72 = arith.constant 0 : index
    %91 = vector.load %arg9[%c1_70, %c0_71, %c0_72] : memref<2x1x33xf32, #tpu.memory_space<vmem>>, vector<1x1x33xf32>
    %92 = vector.shape_cast %91 : vector<1x1x33xf32> to vector<1x33xf32>
    %93 = vector.broadcast %92 : vector<1x33xf32> to vector<8x33xf32>
    %94 = arith.addf %90, %93 : vector<8x33xf32>
    %95 = arith.addf %48, %94 : vector<8x33xf32>
    %96 = vector.extract_strided_slice %95 {offsets = [0, 0], sizes = [8, 32], strides = [1, 1]} : vector<8x33xf32> to vector<8x32xf32>
    %c0_73 = arith.constant 0 : index
    %c0_74 = arith.constant 0 : index
    %97 = vector.load %arg10[%c0_73, %c0_74] : memref<8x32xf32, #tpu.memory_space<vmem>>, vector<8x32xf32>
    tpu.vector_store %arg10[%c0_73, %c0_74], %96 {strides = array<i32>} : memref<8x32xf32, #tpu.memory_space<vmem>>, vector<8x32xf32>,
    %98 = vector.extract_strided_slice %95 {offsets = [0, 32], sizes = [8, 1], strides = [1, 1]} : vector<8x33xf32> to vector<8x1xf32>
    %c0_75 = arith.constant 0 : index
    %c0_76 = arith.constant 0 : index
    %99 = vector.load %arg11[%c0_75, %c0_76] : memref<8x1xf32, #tpu.memory_space<vmem>>, vector<8x1xf32>
    tpu.vector_store %arg11[%c0_75, %c0_76], %98 {strides = array<i32>} : memref<8x1xf32, #tpu.memory_space<vmem>>, vector<8x1xf32>,
    return
  }
  func.func @transform_0(%arg0: i32) -> (i32, i32) {
    %c0_i32 = arith.constant 0 : i32
    %c0_i32_0 = arith.constant 0 : i32
    return %arg0, %c0_i32 : i32, i32
  }
  func.func @transform_1(%arg0: i32) -> (i32, i32, i32) {
    %c0_i32 = arith.constant 0 : i32
    %c0_i32_0 = arith.constant 0 : i32
    %c0_i32_1 = arith.constant 0 : i32
    %c0_i32_2 = arith.constant 0 : i32
    return %c0_i32, %c0_i32_0, %c0_i32_1 : i32, i32, i32
  }
  func.func @transform_2(%arg0: i32) -> (i32, i32, i32) {
    %c0_i32 = arith.constant 0 : i32
    %c0_i32_0 = arith.constant 0 : i32
    %c0_i32_1 = arith.constant 0 : i32
    %c0_i32_2 = arith.constant 0 : i32
    return %c0_i32, %c0_i32_0, %c0_i32_1 : i32, i32, i32
  }
  func.func @transform_3(%arg0: i32) -> (i32, i32, i32) {
    %c0_i32 = arith.constant 0 : i32
    %c0_i32_0 = arith.constant 0 : i32
    %c0_i32_1 = arith.constant 0 : i32
    %c0_i32_2 = arith.constant 0 : i32
    return %c0_i32, %c0_i32_0, %c0_i32_1 : i32, i32, i32
  }
  func.func @transform_4(%arg0: i32) -> (i32, i32, i32) {
    %c0_i32 = arith.constant 0 : i32
    %c0_i32_0 = arith.constant 0 : i32
    %c0_i32_1 = arith.constant 0 : i32
    %c0_i32_2 = arith.constant 0 : i32
    return %c0_i32, %c0_i32_0, %c0_i32_1 : i32, i32, i32
  }
  func.func @transform_5(%arg0: i32) -> (i32, i32, i32) {
    %c0_i32 = arith.constant 0 : i32
    %c0_i32_0 = arith.constant 0 : i32
    %c0_i32_1 = arith.constant 0 : i32
    %c0_i32_2 = arith.constant 0 : i32
    return %c0_i32, %c0_i32_0, %c0_i32_1 : i32, i32, i32
  }
  func.func @transform_6(%arg0: i32) -> (i32, i32, i32) {
    %c0_i32 = arith.constant 0 : i32
    %c0_i32_0 = arith.constant 0 : i32
    %c0_i32_1 = arith.constant 0 : i32
    %c0_i32_2 = arith.constant 0 : i32
    return %c0_i32, %c0_i32_0, %c0_i32_1 : i32, i32, i32
  }
  func.func @transform_7(%arg0: i32) -> (i32, i32, i32) {
    %c0_i32 = arith.constant 0 : i32
    %c0_i32_0 = arith.constant 0 : i32
    %c0_i32_1 = arith.constant 0 : i32
    %c0_i32_2 = arith.constant 0 : i32
    return %c0_i32, %c0_i32_0, %c0_i32_1 : i32, i32, i32
  }
  func.func @transform_8(%arg0: i32) -> (i32, i32, i32) {
    %c0_i32 = arith.constant 0 : i32
    %c0_i32_0 = arith.constant 0 : i32
    %c0_i32_1 = arith.constant 0 : i32
    %c0_i32_2 = arith.constant 0 : i32
    return %c0_i32, %c0_i32_0, %c0_i32_1 : i32, i32, i32
  }
  func.func @transform_9(%arg0: i32) -> (i32, i32) {
    %c0_i32 = arith.constant 0 : i32
    %c0_i32_0 = arith.constant 0 : i32
    return %arg0, %c0_i32 : i32, i32
  }
  func.func @transform_10(%arg0: i32) -> (i32, i32) {
    %c0_i32 = arith.constant 0 : i32
    %c0_i32_0 = arith.constant 0 : i32
    return %arg0, %c0_i32 : i32, i32
  }
}

</mosaic_0001>

<bundles_post_ra>
// kernel: tpu_custom_call.1
= control target key start
LH: loop header
LB: loop body
LE: loop exit
PB: predicated region body
PF: predicated region fallthrough
CT: control target
= control target key end

     0   :  { %s2958_s0 = inlined_call_operand.vmem [shape: bf16[16,33], index: 0, kind: input, shape index: {}]   ;;  %s2959_s1 = inlined_call_operand.vmem [shape: bf16[2,33,128], index: 1, kind: input, shape index: {}]   ;;  %s2960_s2 = inlined_call_operand.vmem [shape: f32[2,1,128], index: 2, kind: input, shape index: {}]   ;;  %s2961_s3 = inlined_call_operand.vmem [shape: bf16[4,128,128], index: 3, kind: input, shape index: {}]   ;;  %s2962_s4 = inlined_call_operand.vmem [shape: f32[4,1,128], index: 4, kind: input, shape index: {}]   ;;  %s2963_s5 = inlined_call_operand.hbm [shape: bf16[2,128,256], index: 5, kind: input, shape index: {}]   ;;  %s2964_s6 = inlined_call_operand.vmem [shape: f32[2,1,256], index: 6, kind: input, shape index: {}]   ;;  %s2965_s7 = inlined_call_operand.vmem [shape: bf16[2,256,33], index: 7, kind: input, shape index: {}]   ;;  %s2966_s8 = inlined_call_operand.vmem [shape: f32[2,1,33], index: 8, kind: input, shape index: {}]   ;;  %s2967_s9 = inlined_call_operand.hbm [shape: f32[16,32], index: 9, kind: output, shape index: {0}]   ;;  %s2968_s10 = inlined_call_operand.vmem [shape: f32[16,1], index: 10, kind: output, shape index: {1}]  }
   0x1   :  { %2969 = sst [smem:[#allocation8_spill]] %s2958_s0 }
   0x2   :  { %16 = vsyncpa [#allocation3], 0 }
   0x3   :  { %17 = vsyncpa [#allocation4], 0 }
   0x4   :  { %19 = vsyncpa [#allocation4 + $0x1], 0  ;;  %s2514_s13 = smov 0   ;;  %s2516_s14 = smov 0  }
   0x5   :  { %s2518_s15 = smov 0   ;;  %s2520_s16 = smov 0  }
   0x6 LB: > { %s2535_s17 = sadd.s32 4294967295, %s2449_s16   ;;  %s1781_s18 = sadd.s32 4294967294, %s2449_s16   ;;  %s2449_s16 = sphi %s2520_s16, %s2978_s16   ;;  %s2445_s15 = sphi %s2518_s15, %s2977_s15   ;;  %s2441_s14 = sphi %s2516_s14, %s2976_s14   ;;  %s2437_s13 = sphi %s2514_s13, %s2975_s13  }
   0x7   : > { %s2539_s19 = sadd.s32 1, %s2449_s16   ;;  %s226_s20 = sadd.s32 1, %s2445_s15 }
   0x8   : > { %s223_s21 = ssub.s32 %s2449_s16, %s2539_s19  ;;  %p236_p0 = scmp.ne.s32.totalorder %s2445_s15, %s2441_s14 }
   0x9   : > { %p224_p1 = scmp.eq.s32.totalorder %s223_s21, 0  ;;  %p237_p2 = scmp.eq.s32.totalorder %s2535_s17, 1 }
   0xa   : > { %p242_p3 = scmp.ne.s32.totalorder %s2441_s14, %s2437_s13  ;;  %p243_p4 = scmp.eq.s32.totalorder %s1781_s18, 1 }
   0xb   : > { %s2550_s22 = scalar_select %p224_p1, %s2445_s15, %s226_s20  }
   0xc   : > { %p2552_p5 = por %p237_p2, %p236_p0  ;;  %p2556_p6 = por %p243_p4, %p242_p3 }
   0xd   : > { %p1782_p7 = scmp.ge.s32.totalorder %s2449_s16, 1  ;;  %p276_p8 = scmp.lt.s32.totalorder %s2449_s16, 3 }
   0xe   : > { %s2971_s24 = scalar_select %p2556_p6, 1, 0 }
   0xf   : > { %p2199_p9 = scmp.eq.s32.totalorder %s2535_s17, 0  ;;  %p2563_p10 = pnand %p1782_p7, %p276_p8 }
  0x10   : > { %s2451_s26 = smov [#allocation2]  }
  0x11   : > { %s300_s27 = sshll.u32 %s2451_s26, 4  ;;  %p2191_p11 = pneg %p2563_p10  ;;  %s301_s27 = int_to_ptr.vmem [resolvable:$true] %s300_s27 }
  0x12   : > { %s2370_s28 = scalar_lea.vmem %s301_s27, 4096  ;;  %p2378_p3 = scmp.lt.s32.totalorder %s301_s27, %s301_s27 }
  0x13   : > { %p2192_p12 = pnand %p2199_p9, %p2191_p11  ;;  %p2371_p0 = scmp.ne.s32.totalorder %s301_s27, %s2370_s28 }
  0x14   : > { %p2379_p4 = scmp.lt.s32.totalorder %s2370_s28, %s2370_s28 }
  0x15   : > { %p2361_p13 = pneg %p2192_p12 }
  0x16   : > { %p2380_p6 = por %p2379_p4, %p2378_p3 }
  0x17   : > { %p2373_p1 = pnand %p2371_p0, %p2361_p13 }
  0x19   : > { %p2374_p2 = pneg %p2373_p1 }
  0x1b   : > { %p2381_p7 = pnand %p2380_p6, %p2374_p2 }
  0x1d   : > { %2384 = shalt.err (!%p2381_p7)
}
  0x1e   : > { %s2452_s29 = smov 128   ;;  %s2453_s30 = smov 8  }
  0x1f   : > { %2194 = dma.hbm_to_vmem [thread:$0]  (!%p2192_p12), %s2963_s5, 4096, %s301_s27, [#allocation3], %s2452_s29, %s2452_s29, %s2453_s30  }
  0x20   : > { %332 = sbr.rel (%p2563_p10) target bundleno = 2168 (0x878), region = 56 }
  0x25   : > { %2428 = dma.done.wait (%p2199_p9), [#allocation3], 4096  }
  0x26   : > { %2430 = vsyncadd (%p2199_p9), [#allocation3], 4294963200  ;;  %v2454_v0 = vmov 0.0   ;;  %vm2455_vm0 = vmmov 0   ;;  %vm415_vm1 = vcmask 1040384   ;;  %p373_p6 = scmp.lt.s32.totalorder %s2535_s17, 1 }
  0x27   : > { %2085 = vmatprep.subr.bf16.mxu0 %v2454_v0  ;;  %2091 = vmatprep.mubr.msk.bf16.mxu0 %vm2455_vm0, %v2454_v0  ;;  %v2456_v1 = vmov 0   ;;  %v2241_v3 = vld [vmem:[%s2959_s1 + $0x10] ss:$0 sps:$4 sm:$0x11]   ;;  %v2243_v5 = vld [vmem:[%s2959_s1 + $0x8] sm:$0xff]   ;;  %v2245_v6 = vld [vmem:[%s2961_s3 + $0x38] sm:$0xff]  }
  0x28   : > { %2095 = vmatprep.subr.bf16.mxu1 %v2454_v0  ;;  %2111 = vmatprep.mubr.msk.bf16.mxu1 %vm2455_vm0, %v2454_v0  ;;  %v2588_v2 = vsel %vm415_vm1, 65535, %v2456_v1  ;;  %s2594_s21 = scalar_select %p373_p6, %s2535_s17, 1  ;;  %v2246_v7 = vld [vmem:[%s2961_s3 + $0x30] sm:$0xff]   ;;  %v2244_v8 = vld [vmem:[%s2959_s1] sm:$0xff]   ;;  %vm411_vm2 = vcmask 269312   ;;  %v2247_v9 = vld [vmem:[%s2961_s3 + $0x28] sm:$0xff]  }
  0x29   : > { %v419_v4 = vand.u32 %v2241_v3, %v2588_v2  ;;  %2096 = vmatpush3.bf16.msra.mxu1 %v2245_v6  ;;  %s2973_s0 = sld [smem:[#allocation8_spill]]  ;;  %v2248_v11 = vld [vmem:[%s2961_s3 + $0x20] sm:$0xff]   ;;  %v2249_v12 = vld [vmem:[%s2961_s3 + $0x18] sm:$0xff]   ;;  %v2250_v13 = vld [vmem:[%s2961_s3 + $0x10] sm:$0xff]   ;;  %s364_s25 = sand.u32 1, %s2441_s14   ;;  %vm1657_vm3 = vcmask 261120  }
  0x2a   : > { %s1788_s27 = sshll.u32 %s2594_s21, 2  ;;  %2097 = vmatprep.subr.bf16.mxu1 %v2454_v0  ;;  %v2251_v14 = vld [vmem:[%s2961_s3 + $0x8] sm:$0xff]   ;;  %v2252_v15 = vld [vmem:[%s2961_s3] sm:$0xff]   ;;  %v2253_v16 = vld [vmem:[%s2961_s3 + $0x78] sm:$0xff]   ;;  %s1787_s26 = sshll.u32 %s364_s25, 3 }
  0x2b   : > { %2086 = vmatpush3.bf16.msra.mxu0 %v419_v4  ;;  %v2254_v17 = vld [vmem:[%s2961_s3 + $0x70] sm:$0xff]   ;;  %v2255_v18 = vld [vmem:[%s2961_s3 + $0x68] sm:$0xff]   ;;  %v2256_v19 = vld [vmem:[%s2961_s3 + $0x60] sm:$0xff]   ;;  %s366_s30 = scalar_lea.vmem [#allocation5], %s1787_s26  ;;  %s2457_s28 = smov 96  }
  0x2c   : > { %2087 = vmatprep.subr.bf16.mxu0 %v2454_v0  ;;  %v2257_v20 = vld [vmem:[%s2961_s3 + $0x58] sm:$0xff]   ;;  %v2258_v21 = vld [vmem:[%s2961_s3 + $0x50] sm:$0xff]   ;;  %v1790_v22 = vld [vmem:[%s2960_s2] ss:$0 sm:$0xff]  ;;  %s1683_s11 = sshll.u32 %s366_s30, 4  ;;  %s2458_s29 = smov [#allocation5]   ;;  %s2915_s11 = int_to_ptr.vmem [resolvable:$true] %s1683_s11 }
  0x2d   : > { %2098 = vmatpush3.bf16.msra.mxu1 %v2246_v7  ;;  %v2259_v30 = vld [vmem:[%s2961_s3 + $0x48] sm:$0xff]   ;;  %v2260_v31 = vld [vmem:[%s2961_s3 + $0x40] sm:$0xff]   ;;  %v2261_v32 = vld [vmem:[#allocation2 + $0x70] ss:$8 sps:$4 sm:$0xff]   ;;  %s2385_s26 = scalar_lea.vmem %s2915_s11, 128 }
  0x2e   : > { %2099 = vmatprep.subr.bf16.mxu1 %v2454_v0  ;;  %v2263_v33 = vld [vmem:[#allocation2 + $0x74] ss:$8 sps:$4 sm:$0xff]   ;;  %v2266_v34 = vld [vmem:[#allocation2 + $0x64] ss:$8 sps:$4 sm:$0xff]   ;;  %v2264_v35 = vld [vmem:[#allocation2 + $0x60] ss:$8 sps:$4 sm:$0xff]   ;;  %p2386_p8 = scmp.ne.s32.totalorder %s2915_s11, %s2385_s26 }
  0x2f   : > { %s376_s20 = scalar_lea.vmem %s2973_s0, %s1788_s27  ;;  %2088 = vmatpush3.bf16.msra.mxu0 %v2243_v5  ;;  %v2269_v36 = vld [vmem:[#allocation2 + $0x54] ss:$8 sps:$4 sm:$0xff]   ;;  %v2267_v37 = vld [vmem:[#allocation2 + $0x50] ss:$8 sps:$4 sm:$0xff]   ;;  %v2272_v38 = vld [vmem:[#allocation2 + $0x44] ss:$8 sps:$4 sm:$0xff]  }
  0x30   : > { %2089 = vmatprep.subr.bf16.mxu0 %v2454_v0  ;;  %v2619_v10 = vld [vmem:[%s376_s20] sm:$0xf]  ;;  %v2275_v40 = vld [vmem:[#allocation2 + $0x34] ss:$8 sps:$4 sm:$0xff]   ;;  %v2273_v41 = vld [vmem:[#allocation2 + $0x30] ss:$8 sps:$4 sm:$0xff]   ;;  %p2387_p9 = pnand %p2386_p8, %p2552_p5 }
  0x31   : > { %2100 = vmatpush3.bf16.msra.mxu1 %v2247_v9  ;;  %v2270_v39 = vld [vmem:[#allocation2 + $0x40] ss:$8 sps:$4 sm:$0xff]   ;;  %v2278_v42 = vld [vmem:[#allocation2 + $0x24] ss:$8 sps:$4 sm:$0xff]   ;;  %v2281_v44 = vld [vmem:[#allocation2 + $0x14] ss:$8 sps:$4 sm:$0xff]  }
  0x32   : > { %2101 = vmatprep.subr.bf16.mxu1 %v2454_v0  ;;  %v2276_v43 = vld [vmem:[#allocation2 + $0x20] ss:$8 sps:$4 sm:$0xff]   ;;  %v2279_v45 = vld [vmem:[#allocation2 + $0x10] ss:$8 sps:$4 sm:$0xff]   ;;  %v2284_v54 = vld [vmem:[#allocation2 + $0x4] ss:$8 sps:$4 sm:$0xff]   ;;  %p2388_p10 = pneg %p2387_p9 }
  0x33   : > { %2090 = vmatpush3.bf16.msra.mxu0 %v2244_v8  ;;  %v1795_v46 = vld [vmem:[%s2962_s4] ss:$0 sm:$0xff]  ;;  %v2285_v56 = vld [vmem:[%s2965_s7 + $0x78] sm:$0xff]   ;;  %v2287_v58 = vld [vmem:[%s2965_s7 + $0x70] sm:$0xff]   ;;  %s1994_s27 = sshll.u32 %s2535_s17, 7  ;;  %s1666_s17 = scalar_lea.sflag [#allocation4], %s364_s25 }
  0x34   : > { %2115 = vmatprep.subr.bf16.mxu0 %v2454_v0  ;;  %v2282_v55 = vld [vmem:[#allocation2] ss:$8 sps:$4 sm:$0xff]   ;;  %v2286_v57 = vld [vmem:[%s2965_s7 + $0x38] sm:$0xff]   ;;  %v2288_v59 = vld [vmem:[%s2965_s7 + $0x30] sm:$0xff]   ;;  %s2913_s20 = scalar_lea.hbm %s2967_s9, %s1994_s27  ;;  %s2389_s0 = sshll.u32 %s2458_s29, 4  ;;  %s2390_s0 = int_to_ptr.vmem [resolvable:$false] %s2389_s0 }
  0x35   : > { %2102 = vmatpush3.bf16.msra.mxu1 %v2248_v11  ;;  %v2289_v60 = vld [vmem:[%s2965_s7 + $0x68] sm:$0xff]   ;;  %v2291_v62 = vld [vmem:[%s2965_s7 + $0x60] sm:$0xff]   ;;  %v2293_v3 = vld [vmem:[%s2965_s7 + $0x58] sm:$0xff]   ;;  %s2391_s12 = scalar_lea.vmem %s2390_s0, 256  ;;  %p2392_p11 = scmp.lt.s32.totalorder %s2915_s11, %s2390_s0 }
  0x36   : > { %2092 = vmatmul.mubr.msk.bf16.vlgmr.msra.gmra.mxu0 %vm411_vm2, %v2619_v10  ;;  %2103 = vmatprep.subr.bf16.mxu1 %v2454_v0  ;;  %v2290_v61 = vld [vmem:[%s2965_s7 + $0x28] sm:$0xff]   ;;  %v2292_v63 = vld [vmem:[%s2965_s7 + $0x20] sm:$0xff]   ;;  %v2294_v4 = vld [vmem:[%s2965_s7 + $0x18] sm:$0xff]   ;;  %p2393_p12 = scmp.lt.s32.totalorder %s2391_s12, %s2385_s26 }
  0x37   : > { %2131 = vmatprep.mubr.msk.bf16.mxu0 %vm2455_vm0, %v2454_v0  ;;  %2116 = vmatpush3.bf16.msra.mxu0 %v2253_v16  ;;  %v2295_v5 = vld [vmem:[%s2965_s7 + $0x50] sm:$0xff]   ;;  %v1821_v7 = vld [vmem:[%s2962_s4 + $0x1] ss:$0 sm:$0xff]  ;;  %v2242_v8 = vld [vmem:[%s2959_s1 + $0x24] ss:$0 sps:$4 sm:$0x11]  }
  0x38   : > { %2117 = vmatprep.subr.bf16.mxu0 %v2454_v0  ;;  %v2296_v6 = vld [vmem:[%s2965_s7 + $0x10] sm:$0xff]   ;;  %p2394_p13 = por %p2393_p12, %p2392_p11 }
  0x39   : > { %2104 = vmatpush3.bf16.msra.mxu1 %v2249_v12 }
  0x3a   : > { %2105 = vmatprep.subr.bf16.mxu1 %v2454_v0  ;;  %p2395_p0 = pnand %p2394_p13, %p2388_p10 }
  0x3b   : > { %2118 = vmatpush3.bf16.msra.mxu0 %v2254_v17 }
  0x3c   : > { %2119 = vmatprep.subr.bf16.mxu0 %v2454_v0 }
  0x3d   : > { %2106 = vmatpush3.bf16.msra.mxu1 %v2250_v13 }
  0x3e   : > { %2107 = vmatprep.subr.bf16.mxu1 %v2454_v0 }
  0x3f   : > { %2120 = vmatpush3.bf16.msra.mxu0 %v2255_v18  ;;  %v2297_v18 = vld [vmem:[%s2965_s7 + $0x48] sm:$0xff]  }
  0x40   : > { %2121 = vmatprep.subr.bf16.mxu0 %v2454_v0 }
  0x41   : > { %2108 = vmatpush3.bf16.msra.mxu1 %v2251_v14  ;;  %v1052_v14 = vand.u32 %v2242_v8, %v2588_v2  ;;  %v2299_v2 = vld [vmem:[%s2965_s7 + $0x40] sm:$0xff]   ;;  %v2317_v8 = vld [vmem:[%s2961_s3 + $0xc8] sm:$0xff]  }
  0x42   : > { %2109 = vmatprep.subr.bf16.mxu1 %v2454_v0 }
  0x43   : > { %2122 = vmatpush3.bf16.msra.mxu0 %v2256_v19  ;;  %v2298_v19 = vld [vmem:[%s2965_s7 + $0x8] sm:$0xff]  }
  0x44   : > { %2123 = vmatprep.subr.bf16.mxu0 %v2454_v0 }
  0x45   : > { %2110 = vmatpush3.bf16.msra.mxu1 %v2252_v15 }
  0x46   : > { %799 = vmatprep.subr.bf16.mxu1 %v2263_v33 }
  0x47   : > { %2124 = vmatpush3.bf16.msra.mxu0 %v2257_v20  ;;  %v2300_v20 = vld [vmem:[%s2965_s7] sm:$0xff]  }
  0x48   : > { %2125 = vmatprep.subr.bf16.mxu0 %v2454_v0 }
  0x4b   : > { %2126 = vmatpush3.bf16.msra.mxu0 %v2258_v21  ;;  %v709_v21 = vlaneseq }
  0x4c   : > { %2127 = vmatprep.subr.bf16.mxu0 %v2454_v0 }
  0x4f   : > { %2128 = vmatpush3.bf16.msra.mxu0 %v2259_v30 }
  0x50   : > { %2129 = vmatprep.subr.bf16.mxu0 %v2454_v0 }
  0x53   : > { %2130 = vmatpush3.bf16.msra.mxu0 %v2260_v31 }
  0x54   : > { %2019 = vmatprep.subr.bf16.mxu0 %v2285_v56  ;;  %v2312_v56 = vld [vmem:[%s2961_s3 + $0xf0] sm:$0xff]  }
  0xf6   : > { %v455_v23 = vpop.f32.mrf.mxu0 }
  0xf7   : > { %v456_v24 = vadd.f32 %v1790_v22, %v455_v23  ;;  %v2745_v22 = vshrl.u32 %v709_v21, 7  ;;  %v2337_v21 = vld [vmem:[#allocation2 + $0x90] ss:$8 sps:$4 sm:$0xff]  }
  0xf8   : > { %v2093_v25 = vpop.f32.mrf.mxu0 }
  0xf9   : > { %v461_v26 = vmax.f32 %v456_v24, 0.0  ;;  %v711_v23 = vsub.s32 0, %v2745_v22  ;;  %v707_v24 = vld [vmem:[%s2964_s6] sm:$0x3]  ;;  %v715_v25 = vsub.s32 1, %v2745_v22 }
  0xfa   : > { %v458_v27 = vpop.f32.mrf.mxu0 }
  0xfb   : > { %v462_v28 = vpack.c.bf16 %v461_v26, %v461_v26  ;;  %v712_v26 = vrot.slane %v707_v24, %v711_v23  ;;  %v716_v27 = vrot.slane %v707_v24, %v715_v25  ;;  %v1891_v24 = vld [vmem:[%s2962_s4 + $0x2] ss:$0 sm:$0xff] }
  0xfc   : > { %v2094_v29 = vpop.f32.mrf.mxu0 }
  0xfd   : > { %2112 = vmatmul.mubr.bf16.vlgmr.msra.gmra.mxu1 %v462_v28 }
  0xfe   : > { %831 = vmatprep.mubr.bf16.mxu1 %v2456_v1  ;;  %800 = vmatpush1.bf16.msra.mxu1 %v2261_v32 }
  0xff   : > { %801 = vmatprep.subr.bf16.mxu1 %v2266_v34 }
 0x102   : > { %802 = vmatpush1.bf16.msra.mxu1 %v2264_v35 }
 0x103   : > { %803 = vmatprep.subr.bf16.mxu1 %v2269_v36  ;;  %v2301_v36 = vld [vmem:[%s2959_s1 + $0x1c] sm:$0xff]  }
 0x106   : > { %804 = vmatpush1.bf16.msra.mxu1 %v2267_v37  ;;  %v2302_v37 = vld [vmem:[%s2959_s1 + $0x14] sm:$0xff]  }
 0x107   : > { %805 = vmatprep.subr.bf16.mxu1 %v2272_v38  ;;  %v2303_v38 = vld [vmem:[%s2961_s3 + $0xb8] sm:$0xff]  }
 0x10a   : > { %806 = vmatpush1.bf16.msra.mxu1 %v2270_v39  ;;  %v2304_v39 = vld [vmem:[%s2961_s3 + $0xb0] sm:$0xff]  }
 0x10b   : > { %807 = vmatprep.subr.bf16.mxu1 %v2275_v40  ;;  %v2305_v40 = vld [vmem:[%s2961_s3 + $0xa8] sm:$0xff]  }
 0x10e   : > { %808 = vmatpush1.bf16.msra.mxu1 %v2273_v41  ;;  %v2306_v41 = vld [vmem:[%s2961_s3 + $0xa0] sm:$0xff]  }
 0x10f   : > { %809 = vmatprep.subr.bf16.mxu1 %v2278_v42  ;;  %v2307_v42 = vld [vmem:[%s2961_s3 + $0x98] sm:$0xff]  }
 0x112   : > { %810 = vmatpush1.bf16.msra.mxu1 %v2276_v43  ;;  %v2308_v43 = vld [vmem:[%s2961_s3 + $0x90] sm:$0xff]  }
 0x113   : > { %811 = vmatprep.subr.bf16.mxu1 %v2281_v44 }
 0x116   : > { %812 = vmatpush1.bf16.msra.mxu1 %v2279_v45  ;;  %v1846_v45 = vld [vmem:[%s2966_s8] ss:$0 sm:$0xff] }
 0x117   : > { %813 = vmatprep.subr.bf16.mxu1 %v2284_v54  ;;  %v2309_v54 = vld [vmem:[%s2961_s3 + $0x88] sm:$0xff]  }
 0x11a   : > { %814 = vmatpush1.bf16.msra.mxu1 %v2282_v55  ;;  %v2311_v55 = vld [vmem:[%s2961_s3 + $0xf8] sm:$0xff]  }
 0x11b   : > { %2135 = vmatprep.subr.bf16.mxu1 %v2454_v0 }
 0x1bd   : > { %v568_v47 = vpop.f32.mrf.mxu1 }
 0x1be   : > { %v569_v48 = vadd.f32 %v1795_v46, %v568_v47  ;;  %v383_v47 = vunpack.c.l.bf16 %v2619_v10  ;;  %v2310_v10 = vld [vmem:[%s2961_s3 + $0x80] sm:$0xff]  }
 0x1bf   : > { %v2113_v49 = vpop.f32.mrf.mxu1 }
 0x1c0   : > { %v574_v50 = vmax.f32 %v569_v48, 0.0 }
 0x1c1   : > { %v571_v51 = vpop.f32.mrf.mxu1 }
 0x1c2   : > { %v575_v52 = vpack.c.bf16 %v574_v50, %v574_v50 }
 0x1c3   : > { %v2114_v53 = vpop.f32.mrf.mxu1 }
 0x1c4   : > { %2132 = vmatmul.mubr.bf16.vlgmr.msra.gmra.mxu0 %v575_v52 }
 0x1c5   : > { %2020 = vmatpush3.bf16.msra.mxu0 %v2286_v57  ;;  %v2313_v57 = vld [vmem:[%s2961_s3 + $0xe8] sm:$0xff]  }
 0x1c6   : > { %2021 = vmatprep.subr.bf16.mxu0 %v2287_v58  ;;  %v2314_v58 = vld [vmem:[%s2961_s3 + $0xe0] sm:$0xff]  }
 0x1c9   : > { %2022 = vmatpush3.bf16.msra.mxu0 %v2288_v59  ;;  %v2315_v59 = vld [vmem:[%s2961_s3 + $0xd8] sm:$0xff]  }
 0x1ca   : > { %2023 = vmatprep.subr.bf16.mxu0 %v2289_v60  ;;  %v2316_v60 = vld [vmem:[%s2961_s3 + $0xd0] sm:$0xff]  }
 0x1cd   : > { %2024 = vmatpush3.bf16.msra.mxu0 %v2290_v61  ;;  %v1869_v61 = vld [vmem:[%s2960_s2 + $0x1] ss:$0 sm:$0xff] }
 0x1ce   : > { %2025 = vmatprep.subr.bf16.mxu0 %v2291_v62 }
 0x1d1   : > { %2026 = vmatpush3.bf16.msra.mxu0 %v2292_v63 }
 0x1d2   : > { %2027 = vmatprep.subr.bf16.mxu0 %v2293_v3 }
 0x1d5   : > { %2028 = vmatpush3.bf16.msra.mxu0 %v2294_v4 }
 0x1d6   : > { %2029 = vmatprep.subr.bf16.mxu0 %v2295_v5 }
 0x1d9   : > { %2030 = vmatpush3.bf16.msra.mxu0 %v2296_v6 }
 0x1da   : > { %2031 = vmatprep.subr.bf16.mxu0 %v2297_v18  ;;  %v2331_v18 = vld [vmem:[#allocation2 + $0xb0] ss:$8 sps:$4 sm:$0xff]  }
 0x1dd   : > { %2032 = vmatpush3.bf16.msra.mxu0 %v2298_v19  ;;  %v2336_v19 = vld [vmem:[#allocation2 + $0xa4] ss:$8 sps:$4 sm:$0xff]  }
 0x1de   : > { %2033 = vmatprep.subr.bf16.mxu0 %v2299_v2  ;;  %v2334_v2 = vld [vmem:[#allocation2 + $0xa0] ss:$8 sps:$4 sm:$0xff]  }
 0x1e1   : > { %2034 = vmatpush3.bf16.msra.mxu0 %v2300_v20  ;;  %v2339_v20 = vld [vmem:[#allocation2 + $0x94] ss:$8 sps:$4 sm:$0xff]  }
 0x1e2   : > { %2145 = vmatprep.subr.bf16.mxu0 %v2454_v0 }
 0x284   : > { %v683_v9 = vpop.f32.mrf.mxu0 }
 0x285   : > { %v684_v11 = vadd.f32 %v1821_v7, %v683_v9  ;;  %v2318_v9 = vld [vmem:[%s2961_s3 + $0xc0] sm:$0xff]  }
 0x286   : > { %v2133_v12 = vpop.f32.mrf.mxu0 }
 0x287   : > { %v689_v13 = vmax.f32 %v684_v11, 0.0  ;;  %v2319_v11 = vld [vmem:[#allocation2 + $0xf0] ss:$8 sps:$4 sm:$0xff]   ;;  %v2321_v12 = vld [vmem:[#allocation2 + $0xf4] ss:$8 sps:$4 sm:$0xff]  }
 0x288   : > { %v686_v15 = vpop.f32.mrf.mxu0 }
 0x289   : > { %v690_v16 = vpack.c.bf16 %v689_v13, %v689_v13  ;;  %v2324_v13 = vld [vmem:[#allocation2 + $0xe4] ss:$8 sps:$4 sm:$0xff]   ;;  %v2325_v15 = vld [vmem:[#allocation2 + $0xd0] ss:$8 sps:$4 sm:$0xff]  }
 0x28a   : > { %v2134_v17 = vpop.f32.mrf.mxu0 }
 0x28b   : > { %832 = vmatmul.mubr.bf16.vlgmr.msra.gmra.mxu1 %v690_v16  ;;  %v2330_v16 = vld [vmem:[#allocation2 + $0xc4] ss:$8 sps:$4 sm:$0xff]   ;;  %v2328_v17 = vld [vmem:[#allocation2 + $0xc0] ss:$8 sps:$4 sm:$0xff]  }
 0x28c   : > { %2136 = vmatpush3.bf16.msra.mxu1 %v1052_v14  ;;  %2141 = vmatprep.mubr.msk.bf16.mxu1 %vm2455_vm0, %v2454_v0  ;;  %v2322_v14 = vld [vmem:[#allocation2 + $0xe0] ss:$8 sps:$4 sm:$0xff]  }
 0x28d   : > { %2137 = vmatprep.subr.bf16.mxu1 %v2454_v0 }
 0x290   : > { %2138 = vmatpush3.bf16.msra.mxu1 %v2301_v36  ;;  %v2344_v36 = vld [vmem:[%s2965_s7 + $0xb8] sm:$0xff]  }
 0x291   : > { %2139 = vmatprep.subr.bf16.mxu1 %v2454_v0 }
 0x294   : > { %2140 = vmatpush3.bf16.msra.mxu1 %v2302_v37  ;;  %v2345_v37 = vld [vmem:[%s2965_s7 + $0xf0] sm:$0xff]  }
 0x295   : > { %2165 = vmatprep.subr.bf16.mxu1 %v2454_v0 }
 0x34b   : > { %v833_v28 = vpop.f32.mrf.mxu1 }
 0x34c   : > { %v834_v29 = vadd.f32 %v833_v28, %v712_v26 }
 0x34d   : > { %v835_v30 = vpop.f32.mrf.mxu1 }
 0x34e   : > { %v836_v31 = vadd.f32 %v835_v30, %v716_v27  ;;  %v840_v34 = vpack.c.bf16 %v834_v29, %v834_v29 }
 0x34f   : > { %v837_v32 = vpop.f32.mrf.mxu1 }
 0x350   : > { %v841_v33 = vpack.c.bf16 %v836_v31, %v836_v31 }
 0x351   : > { %v838_v35 = vpop.f32.mrf.mxu1 }
 0x352   : > { %1009 = vmatprep.mubr.bf16.mxu0 %v841_v33  ;;  %v2342_v33 = vld [vmem:[#allocation2 + $0x84] ss:$8 sps:$4 sm:$0xff]   ;;  %v2343_v35 = vld [vmem:[%s2965_s7 + $0xf8] sm:$0xff]  }
 0x353   : > { %1010 = vmatmul.mubr.bf16.vlgmr.msra.gmra.mxu0 %v840_v34  ;;  %v2340_v34 = vld [vmem:[#allocation2 + $0x80] ss:$8 sps:$4 sm:$0xff]  }
 0x354   : > { %2161 = vmatprep.mubr.msk.bf16.mxu0 %vm2455_vm0, %v2454_v0  ;;  %2146 = vmatpush3.bf16.msra.mxu0 %v2303_v38  ;;  %v2346_v38 = vld [vmem:[%s2965_s7 + $0xb0] sm:$0xff]  }
 0x355   : > { %2147 = vmatprep.subr.bf16.mxu0 %v2454_v0 }
 0x358   : > { %2148 = vmatpush3.bf16.msra.mxu0 %v2304_v39  ;;  %v2347_v39 = vld [vmem:[%s2965_s7 + $0xe8] sm:$0xff]  }
 0x359   : > { %2149 = vmatprep.subr.bf16.mxu0 %v2454_v0 }
 0x35c   : > { %2150 = vmatpush3.bf16.msra.mxu0 %v2305_v40  ;;  %v2348_v40 = vld [vmem:[%s2965_s7 + $0xa8] sm:$0xff]  }
 0x35d   : > { %2151 = vmatprep.subr.bf16.mxu0 %v2454_v0 }
 0x360   : > { %2152 = vmatpush3.bf16.msra.mxu0 %v2306_v41  ;;  %v2349_v41 = vld [vmem:[%s2965_s7 + $0xe0] sm:$0xff]  }
 0x361   : > { %2153 = vmatprep.subr.bf16.mxu0 %v2454_v0 }
 0x364   : > { %2154 = vmatpush3.bf16.msra.mxu0 %v2307_v42  ;;  %v2350_v42 = vld [vmem:[%s2965_s7 + $0xa0] sm:$0xff]  }
 0x365   : > { %2155 = vmatprep.subr.bf16.mxu0 %v2454_v0 }
 0x368   : > { %2156 = vmatpush3.bf16.msra.mxu0 %v2308_v43  ;;  %v2351_v43 = vld [vmem:[%s2965_s7 + $0xd8] sm:$0xff]  }
 0x369   : > { %2157 = vmatprep.subr.bf16.mxu0 %v2454_v0 }
 0x36c   : > { %2158 = vmatpush3.bf16.msra.mxu0 %v2309_v54 }
 0x36d   : > { %2159 = vmatprep.subr.bf16.mxu0 %v2454_v0 }
 0x370   : > { %2160 = vmatpush3.bf16.msra.mxu0 %v2310_v10 }
 0x371   : > { %1436 = vmatprep.subr.bf16.mxu0 %v2321_v12 }
 0x413   : > { %v2035_v44 = vpop.f32.mrf.mxu0 }
 0x415   : > { %v2036_v46 = vpop.f32.mrf.mxu0 }
 0x416   : > { %v2037_v48 = vadd.f32 %v2036_v46, %v2035_v44  ;;  %v2352_v44 = vld [vmem:[%s2965_s7 + $0x98] sm:$0xff]   ;;  %v2354_v46 = vld [vmem:[%s2965_s7 + $0x90] sm:$0xff]  }
 0x417   : > { %v2038_v49 = vpop.f32.mrf.mxu0 }
 0x418   : > { %v1012_v50 = vadd.f32 %v2037_v48, %v1846_v45  ;;  %v2353_v45 = vld [vmem:[%s2965_s7 + $0xd0] sm:$0xff]  }
 0x419   : > { %v2039_v51 = vpop.f32.mrf.mxu0 }
 0x41a   : > { %v2794_v52 = vadd.f32 %v1012_v50, %v383_v47  ;;  %v1917_v47 = vld [vmem:[%s2962_s4 + $0x3] ss:$0 sm:$0xff] }
 0x41c   : > { %v1018_v53 = vpack.c.bf16 %v2794_v52, %v2794_v52 }
 0x41e   : > { %2142 = vmatmul.mubr.msk.bf16.vlgmr.msra.gmra.mxu1 %vm411_vm2, %v1018_v53 }
 0x41f   : > { %2181 = vmatprep.mubr.msk.bf16.mxu1 %vm2455_vm0, %v2454_v0  ;;  %2166 = vmatpush3.bf16.msra.mxu1 %v2311_v55  ;;  %v2355_v55 = vld [vmem:[%s2965_s7 + $0xc8] sm:$0xff]  }
 0x420   : > { %2167 = vmatprep.subr.bf16.mxu1 %v2454_v0 }
 0x423   : > { %2168 = vmatpush3.bf16.msra.mxu1 %v2312_v56  ;;  %v2356_v56 = vld [vmem:[%s2965_s7 + $0x88] sm:$0xff]  }
 0x424   : > { %2169 = vmatprep.subr.bf16.mxu1 %v2454_v0 }
 0x427   : > { %2170 = vmatpush3.bf16.msra.mxu1 %v2313_v57  ;;  %v2357_v57 = vld [vmem:[%s2965_s7 + $0xc0] sm:$0xff]  }
 0x428   : > { %2171 = vmatprep.subr.bf16.mxu1 %v2454_v0 }
 0x42b   : > { %2172 = vmatpush3.bf16.msra.mxu1 %v2314_v58  ;;  %v2358_v58 = vld [vmem:[%s2965_s7 + $0x80] sm:$0xff]  }
 0x42c   : > { %2173 = vmatprep.subr.bf16.mxu1 %v2454_v0 }
 0x42f   : > { %2174 = vmatpush3.bf16.msra.mxu1 %v2315_v59  ;;  %v1926_v59 = vld [vmem:[%s2964_s6 + $0x2] sm:$0x3] }
 0x430   : > { %2175 = vmatprep.subr.bf16.mxu1 %v2454_v0 }
 0x433   : > { %2176 = vmatpush3.bf16.msra.mxu1 %v2316_v60  ;;  %v1349_v60 = vrot.slane %v1926_v59, %v711_v23  ;;  %v1976_v23 = vld [vmem:[%s2966_s8 + $0x1] ss:$0 sm:$0xff] }
 0x434   : > { %2177 = vmatprep.subr.bf16.mxu1 %v2454_v0 }
 0x437   : > { %2178 = vmatpush3.bf16.msra.mxu1 %v2317_v8 }
 0x438   : > { %2179 = vmatprep.subr.bf16.mxu1 %v2454_v0  ;;  %v2333_v0 = vld [vmem:[#allocation2 + $0xb4] ss:$8 sps:$4 sm:$0xff]  }
 0x43b   : > { %2180 = vmatpush3.bf16.msra.mxu1 %v2318_v9 }
 0x43c   : > { %2063 = vmatprep.subr.bf16.mxu1 %v2343_v35 }
 0x4de   : > { %v1088_v62 = vpop.f32.mrf.mxu1 }
 0x4df   : > { %v1089_v63 = vadd.f32 %v1869_v61, %v1088_v62  ;;  %v1353_v61 = vrot.slane %v1926_v59, %v715_v25 }
 0x4e0   : > { %v2143_v3 = vpop.f32.mrf.mxu1 }
 0x4e1   : > { %v1094_v4 = vmax.f32 %v1089_v63, 0.0 }
 0x4e2   : > { %v1091_v5 = vpop.f32.mrf.mxu1 }
 0x4e3   : > { %v1095_v6 = vpack.c.bf16 %v1094_v4, %v1094_v4 }
 0x4e4   : > { %v2144_v7 = vpop.f32.mrf.mxu1 }
 0x4e5   : > { %2162 = vmatmul.mubr.bf16.vlgmr.msra.gmra.mxu0 %v1095_v6 }
 0x4e6   : > { %1468 = vmatprep.mubr.bf16.mxu0 %v2456_v1  ;;  %1437 = vmatpush1.bf16.msra.mxu0 %v2319_v11  ;;  %v2327_v1 = vld [vmem:[#allocation2 + $0xd4] ss:$8 sps:$4 sm:$0xff]  }
 0x4e7   : > { %1438 = vmatprep.subr.bf16.mxu0 %v2324_v13 }
 0x4ea   : > { %1439 = vmatpush1.bf16.msra.mxu0 %v2322_v14 }
 0x4eb   : > { %1440 = vmatprep.subr.bf16.mxu0 %v2327_v1 }
 0x4ee   : > { %1441 = vmatpush1.bf16.msra.mxu0 %v2325_v15 }
 0x4ef   : > { %1442 = vmatprep.subr.bf16.mxu0 %v2330_v16 }
 0x4f2   : > { %1443 = vmatpush1.bf16.msra.mxu0 %v2328_v17 }
 0x4f3   : > { %1444 = vmatprep.subr.bf16.mxu0 %v2333_v0 }
 0x4f6   : > { %1445 = vmatpush1.bf16.msra.mxu0 %v2331_v18 }
 0x4f7   : > { %1446 = vmatprep.subr.bf16.mxu0 %v2336_v19 }
 0x4fa   : > { %1447 = vmatpush1.bf16.msra.mxu0 %v2334_v2 }
 0x4fb   : > { %1448 = vmatprep.subr.bf16.mxu0 %v2339_v20 }
 0x4fe   : > { %1449 = vmatpush1.bf16.msra.mxu0 %v2337_v21 }
 0x4ff   : > { %1450 = vmatprep.subr.bf16.mxu0 %v2342_v33 }
 0x502   : > { %1451 = vmatpush1.bf16.msra.mxu0 %v2340_v34 }
 0x5a5   : > { %v1203_v26 = vpop.f32.mrf.mxu0 }
 0x5a6   : > { %v1204_v27 = vadd.f32 %v1891_v24, %v1203_v26 }
 0x5a7   : > { %v2163_v28 = vpop.f32.mrf.mxu0 }
 0x5a8   : > { %v1209_v29 = vmax.f32 %v1204_v27, 0.0 }
 0x5a9   : > { %v1206_v30 = vpop.f32.mrf.mxu0 }
 0x5aa   : > { %v1210_v31 = vpack.c.bf16 %v1209_v29, %v1209_v29 }
 0x5ab   : > { %v2164_v32 = vpop.f32.mrf.mxu0 }
 0x5ac   : > { %2182 = vmatmul.mubr.bf16.vlgmr.msra.gmra.mxu1 %v1210_v31 }
 0x5ad   : > { %2064 = vmatpush3.bf16.msra.mxu1 %v2344_v36 }
 0x5ae   : > { %2065 = vmatprep.subr.bf16.mxu1 %v2345_v37 }
 0x5b1   : > { %2066 = vmatpush3.bf16.msra.mxu1 %v2346_v38 }
 0x5b2   : > { %2067 = vmatprep.subr.bf16.mxu1 %v2347_v39 }
 0x5b5   : > { %2068 = vmatpush3.bf16.msra.mxu1 %v2348_v40 }
 0x5b6   : > { %2069 = vmatprep.subr.bf16.mxu1 %v2349_v41 }
 0x5b9   : > { %2070 = vmatpush3.bf16.msra.mxu1 %v2350_v42 }
 0x5ba   : > { %2071 = vmatprep.subr.bf16.mxu1 %v2351_v43 }
 0x5bd   : > { %2072 = vmatpush3.bf16.msra.mxu1 %v2352_v44 }
 0x5be   : > { %2073 = vmatprep.subr.bf16.mxu1 %v2353_v45 }
 0x5c1   : > { %2074 = vmatpush3.bf16.msra.mxu1 %v2354_v46 }
 0x5c2   : > { %2075 = vmatprep.subr.bf16.mxu1 %v2355_v55 }
 0x5c5   : > { %2076 = vmatpush3.bf16.msra.mxu1 %v2356_v56 }
 0x5c6   : > { %2077 = vmatprep.subr.bf16.mxu1 %v2357_v57 }
 0x5c9   : > { %2078 = vmatpush3.bf16.msra.mxu1 %v2358_v58 }
 0x66c   : > { %v1318_v48 = vpop.f32.mrf.mxu1 }
 0x66d   : > { %v1319_v49 = vadd.f32 %v1917_v47, %v1318_v48 }
 0x66e   : > { %v2183_v50 = vpop.f32.mrf.mxu1 }
 0x66f   : > { %v1324_v51 = vmax.f32 %v1319_v49, 0.0 }
 0x670   : > { %v1321_v53 = vpop.f32.mrf.mxu1 }
 0x671   : > { %v1325_v54 = vpack.c.bf16 %v1324_v51, %v1324_v51 }
 0x672   : > { %v2184_v10 = vpop.f32.mrf.mxu1 }
 0x673   : > { %1469 = vmatmul.mubr.bf16.vlgmr.msra.gmra.mxu0 %v1325_v54 }
 0x733   : > { %v1470_v62 = vpop.f32.mrf.mxu0 }
 0x734   : > { %v1471_v63 = vadd.f32 %v1470_v62, %v1349_v60 }
 0x735   : > { %v1472_v3 = vpop.f32.mrf.mxu0 }
 0x736   : > { %v1473_v4 = vadd.f32 %v1472_v3, %v1353_v61  ;;  %v1477_v7 = vpack.c.bf16 %v1471_v63, %v1471_v63 }
 0x737   : > { %v1474_v5 = vpop.f32.mrf.mxu0 }
 0x738   : > { %v1478_v6 = vpack.c.bf16 %v1473_v4, %v1473_v4 }
 0x739   : > { %v1475_v8 = vpop.f32.mrf.mxu0 }
 0x73a   : > { %1648 = vmatprep.mubr.bf16.mxu1 %v1478_v6 }
 0x73b   : > { %1649 = vmatmul.mubr.bf16.vlgmr.msra.gmra.mxu1 %v1477_v7 }
 0x7fb   : > { %v2079_v9 = vpop.f32.mrf.mxu1 }
 0x7fd   : > { %v2080_v22 = vpop.f32.mrf.mxu1 }
 0x7fe   : > { %v2081_v25 = vadd.f32 %v2080_v22, %v2079_v9 }
 0x7ff   : > { %v2082_v11 = vpop.f32.mrf.mxu1 }
 0x800   : > { %v1651_v12 = vadd.f32 %v2081_v25, %v1976_v23 }
 0x801   : > { %v2083_v13 = vpop.f32.mrf.mxu1 }
 0x802   : > { %v1656_v14 = vadd.f32 %v1651_v12, %v2794_v52 }
 0x804   : > { %1660 = vrot.lane.b32.xlu0 %v1656_v14, %s2457_s28  ;;  %1658 = vst.msk [vmem:[%s366_s30] sm:$0xff] %vm1657_vm3, %v1656_v14 }
 0x805   : > { %2398 = shalt.err (!%p2395_p0)
}
 0x806   : > { %s2399_s27 = scalar_lea.hbm %s2913_s20, 128  ;;  %s2403_s18 = scalar_lea.hbm %s2967_s9, 256 }
 0x807   : > { %p2400_p1 = scmp.ne.s32.totalorder %s2913_s20, %s2399_s27  ;;  %p2404_p4 = scmp.lt.s32.totalorder %s2913_s20, %s2967_s9 }
 0x808   : > { %p2405_p7 = scmp.lt.s32.totalorder %s2403_s18, %s2399_s27 }
 0x809   : > { %p2401_p2 = pnand %p2400_p1, %p2552_p5 }
 0x80a   : > { %p2406_p6 = por %p2405_p7, %p2404_p4 }
 0x80b   : > { %p2402_p3 = pneg %p2401_p2 }
 0x80d   : > { %p2407_p8 = pnand %p2406_p6, %p2402_p3 }
 0x80f   : > { %2410 = shalt.err (!%p2407_p8)
}
 0x810   : > { %2189 = dma.vmem_to_hbm [thread:$0]  (%p2552_p5), %s2915_s11, 128, %s2913_s20, %s1666_s17   ;;  %vm1663_vm4 = vcmask 7168  }
 0x811   : > { %s1789_s0 = sshll.u32 %s2594_s21, 3 }
 0x812   : > { %s380_s25 = scalar_lea.vmem %s2968_s10, %s1789_s0 }
 0x876   : > { %v1661_v52 = vpop.permute.xlu0 %1660 }
 0x877   : > { %1664 = vst.msk [vmem:[%s380_s25] sm:$0xff] %vm1663_vm4, %v1661_v52 }
 0x878 PF: > { %p2201_p9 = scmp.ge.s32.totalorder %s2449_s16, 2  ;;  %s1698_s27 = sand.u32 1, %s2437_s13  }
 0x879   : > { %p2974_p10 = scmp.ne.s32.totalorder %s2971_s24, 0  ;;  %s1699_s23 = scalar_lea.sflag [#allocation4], %s1698_s27 }
 0x87b   : > { %p2196_p11 = pnand %p2201_p9, %p2974_p10 }
 0x87d   : > { %p2197_p12 = pneg %p2196_p11 }
 0x87f   : > { %2432 = dma.done.wait (%p2197_p12), %s1699_s23, 128  }
 0x880   : > { %2434 = vsyncadd (%p2197_p12), %s1699_s23, 4294967168  ;;  %p22_p5 = scmp.ge.s32.totalorder %s2539_s19, 4   ;;  %s2975_s13 = smov %s2441_s14 }
 0x881   : > { %s2976_s14 = smov %s2445_s15  ;;  %s2977_s15 = smov %s2550_s22 }
 0x882   : > { %s2978_s16 = smov %s2539_s19  ;;  %24 = sbr.rel (!%p22_p5) target bundleno = 6 (0x6), region = 120 }
 0x887   :  { %1711 = vsyncpa [#allocation3], 1 }
 0x888   :  { %1713 = vsyncpa [#allocation3 + $0x1], 1 }
 0x889   :  { %1714 = vsyncpa [#allocation4], 1 }
 0x88a   :  { %1716 = vsyncpa [#allocation4 + $0x1], 1 }

// kernel: tpu_custom_call.1
= control target key start
LH: loop header
LB: loop body
LE: loop exit
PB: predicated region body
PF: predicated region fallthrough
CT: control target
= control target key end

     0   :  { %s2958_s0 = inlined_call_operand.vmem [shape: bf16[16,33], index: 0, kind: input, shape index: {}]   ;;  %s2959_s1 = inlined_call_operand.vmem [shape: bf16[2,33,128], index: 1, kind: input, shape index: {}]   ;;  %s2960_s2 = inlined_call_operand.vmem [shape: f32[2,1,128], index: 2, kind: input, shape index: {}]   ;;  %s2961_s3 = inlined_call_operand.vmem [shape: bf16[4,128,128], index: 3, kind: input, shape index: {}]   ;;  %s2962_s4 = inlined_call_operand.vmem [shape: f32[4,1,128], index: 4, kind: input, shape index: {}]   ;;  %s2963_s5 = inlined_call_operand.hbm [shape: bf16[2,128,256], index: 5, kind: input, shape index: {}]   ;;  %s2964_s6 = inlined_call_operand.vmem [shape: f32[2,1,256], index: 6, kind: input, shape index: {}]   ;;  %s2965_s7 = inlined_call_operand.vmem [shape: bf16[2,256,33], index: 7, kind: input, shape index: {}]   ;;  %s2966_s8 = inlined_call_operand.vmem [shape: f32[2,1,33], index: 8, kind: input, shape index: {}]   ;;  %s2967_s9 = inlined_call_operand.hbm [shape: f32[16,32], index: 9, kind: output, shape index: {0}]   ;;  %s2968_s10 = inlined_call_operand.vmem [shape: f32[16,1], index: 10, kind: output, shape index: {1}]  }
   0x1   :  { %2969 = sst [smem:[#allocation8_spill]] %s2958_s0 }
   0x2   :  { %16 = vsyncpa [#allocation3], 0 }
   0x3   :  { %17 = vsyncpa [#allocation4], 0 }
   0x4   :  { %19 = vsyncpa [#allocation4 + $0x1], 0  ;;  %s2514_s13 = smov 0   ;;  %s2516_s14 = smov 0  }
   0x5   :  { %s2518_s15 = smov 0   ;;  %s2520_s16 = smov 0  }
   0x6 LB: > { %s2535_s17 = sadd.s32 4294967295, %s2449_s16   ;;  %s1781_s18 = sadd.s32 4294967294, %s2449_s16   ;;  %s2449_s16 = sphi %s2520_s16, %s2978_s16   ;;  %s2445_s15 = sphi %s2518_s15, %s2977_s15   ;;  %s2441_s14 = sphi %s2516_s14, %s2976_s14   ;;  %s2437_s13 = sphi %s2514_s13, %s2975_s13  }
   0x7   : > { %s2539_s19 = sadd.s32 1, %s2449_s16   ;;  %s226_s20 = sadd.s32 1, %s2445_s15 }
   0x8   : > { %s223_s21 = ssub.s32 %s2449_s16, %s2539_s19  ;;  %p236_p0 = scmp.ne.s32.totalorder %s2445_s15, %s2441_s14 }
   0x9   : > { %p224_p1 = scmp.eq.s32.totalorder %s223_s21, 0  ;;  %p237_p2 = scmp.eq.s32.totalorder %s2535_s17, 1 }
   0xa   : > { %p242_p3 = scmp.ne.s32.totalorder %s2441_s14, %s2437_s13  ;;  %p243_p4 = scmp.eq.s32.totalorder %s1781_s18, 1 }
   0xb   : > { %s2550_s22 = scalar_select %p224_p1, %s2445_s15, %s226_s20  }
   0xc   : > { %p2552_p5 = por %p237_p2, %p236_p0  ;;  %p2556_p6 = por %p243_p4, %p242_p3 }
   0xd   : > { %p1782_p7 = scmp.ge.s32.totalorder %s2449_s16, 1  ;;  %p276_p8 = scmp.lt.s32.totalorder %s2449_s16, 3 }
   0xe   : > { %s2971_s24 = scalar_select %p2556_p6, 1, 0 }
   0xf   : > { %p2199_p9 = scmp.eq.s32.totalorder %s2535_s17, 0  ;;  %p2563_p10 = pnand %p1782_p7, %p276_p8 }
  0x10   : > { %s2451_s26 = smov [#allocation2]  }
  0x11   : > { %s300_s27 = sshll.u32 %s2451_s26, 4  ;;  %p2191_p11 = pneg %p2563_p10  ;;  %s301_s27 = int_to_ptr.vmem [resolvable:$true] %s300_s27 }
  0x12   : > { %s2370_s28 = scalar_lea.vmem %s301_s27, 4096  ;;  %p2378_p3 = scmp.lt.s32.totalorder %s301_s27, %s301_s27 }
  0x13   : > { %p2192_p12 = pnand %p2199_p9, %p2191_p11  ;;  %p2371_p0 = scmp.ne.s32.totalorder %s301_s27, %s2370_s28 }
  0x14   : > { %p2379_p4 = scmp.lt.s32.totalorder %s2370_s28, %s2370_s28 }
  0x15   : > { %p2361_p13 = pneg %p2192_p12 }
  0x16   : > { %p2380_p6 = por %p2379_p4, %p2378_p3 }
  0x17   : > { %p2373_p1 = pnand %p2371_p0, %p2361_p13 }
  0x19   : > { %p2374_p2 = pneg %p2373_p1 }
  0x1b   : > { %p2381_p7 = pnand %p2380_p6, %p2374_p2 }
  0x1d   : > { %2384 = shalt.err (!%p2381_p7)
}
  0x1e   : > { %s2452_s29 = smov 128   ;;  %s2453_s30 = smov 8  }
  0x1f   : > { %2194 = dma.hbm_to_vmem [thread:$0]  (!%p2192_p12), %s2963_s5, 4096, %s301_s27, [#allocation3], %s2452_s29, %s2452_s29, %s2453_s30  }
  0x20   : > { %332 = sbr.rel (%p2563_p10) target bundleno = 2168 (0x878), region = 56 }
  0x25   : > { %2428 = dma.done.wait (%p2199_p9), [#allocation3], 4096  }
  0x26   : > { %2430 = vsyncadd (%p2199_p9), [#allocation3], 4294963200  ;;  %v2454_v0 = vmov 0.0   ;;  %vm2455_vm0 = vmmov 0   ;;  %vm415_vm1 = vcmask 1040384   ;;  %p373_p6 = scmp.lt.s32.totalorder %s2535_s17, 1 }
  0x27   : > { %2085 = vmatprep.subr.bf16.mxu0 %v2454_v0  ;;  %2091 = vmatprep.mubr.msk.bf16.mxu0 %vm2455_vm0, %v2454_v0  ;;  %v2456_v1 = vmov 0   ;;  %v2241_v3 = vld [vmem:[%s2959_s1 + $0x10] ss:$0 sps:$4 sm:$0x11]   ;;  %v2243_v5 = vld [vmem:[%s2959_s1 + $0x8] sm:$0xff]   ;;  %v2245_v6 = vld [vmem:[%s2961_s3 + $0x38] sm:$0xff]  }
  0x28   : > { %2095 = vmatprep.subr.bf16.mxu1 %v2454_v0  ;;  %2111 = vmatprep.mubr.msk.bf16.mxu1 %vm2455_vm0, %v2454_v0  ;;  %v2588_v2 = vsel %vm415_vm1, 65535, %v2456_v1  ;;  %s2594_s21 = scalar_select %p373_p6, %s2535_s17, 1  ;;  %v2246_v7 = vld [vmem:[%s2961_s3 + $0x30] sm:$0xff]   ;;  %v2244_v8 = vld [vmem:[%s2959_s1] sm:$0xff]   ;;  %vm411_vm2 = vcmask 269312   ;;  %v2247_v9 = vld [vmem:[%s2961_s3 + $0x28] sm:$0xff]  }
  0x29   : > { %v419_v4 = vand.u32 %v2241_v3, %v2588_v2  ;;  %2096 = vmatpush3.bf16.msra.mxu1 %v2245_v6  ;;  %s2973_s0 = sld [smem:[#allocation8_spill]]  ;;  %v2248_v11 = vld [vmem:[%s2961_s3 + $0x20] sm:$0xff]   ;;  %v2249_v12 = vld [vmem:[%s2961_s3 + $0x18] sm:$0xff]   ;;  %v2250_v13 = vld [vmem:[%s2961_s3 + $0x10] sm:$0xff]   ;;  %s364_s25 = sand.u32 1, %s2441_s14   ;;  %vm1657_vm3 = vcmask 261120  }
  0x2a   : > { %s1788_s27 = sshll.u32 %s2594_s21, 2  ;;  %2097 = vmatprep.subr.bf16.mxu1 %v2454_v0  ;;  %v2251_v14 = vld [vmem:[%s2961_s3 + $0x8] sm:$0xff]   ;;  %v2252_v15 = vld [vmem:[%s2961_s3] sm:$0xff]   ;;  %v2253_v16 = vld [vmem:[%s2961_s3 + $0x78] sm:$0xff]   ;;  %s1787_s26 = sshll.u32 %s364_s25, 3 }
  0x2b   : > { %2086 = vmatpush3.bf16.msra.mxu0 %v419_v4  ;;  %v2254_v17 = vld [vmem:[%s2961_s3 + $0x70] sm:$0xff]   ;;  %v2255_v18 = vld [vmem:[%s2961_s3 + $0x68] sm:$0xff]   ;;  %v2256_v19 = vld [vmem:[%s2961_s3 + $0x60] sm:$0xff]   ;;  %s366_s30 = scalar_lea.vmem [#allocation5], %s1787_s26  ;;  %s2457_s28 = smov 96  }
  0x2c   : > { %2087 = vmatprep.subr.bf16.mxu0 %v2454_v0  ;;  %v2257_v20 = vld [vmem:[%s2961_s3 + $0x58] sm:$0xff]   ;;  %v2258_v21 = vld [vmem:[%s2961_s3 + $0x50] sm:$0xff]   ;;  %v1790_v22 = vld [vmem:[%s2960_s2] ss:$0 sm:$0xff]  ;;  %s1683_s11 = sshll.u32 %s366_s30, 4  ;;  %s2458_s29 = smov [#allocation5]   ;;  %s2915_s11 = int_to_ptr.vmem [resolvable:$true] %s1683_s11 }
  0x2d   : > { %2098 = vmatpush3.bf16.msra.mxu1 %v2246_v7  ;;  %v2259_v30 = vld [vmem:[%s2961_s3 + $0x48] sm:$0xff]   ;;  %v2260_v31 = vld [vmem:[%s2961_s3 + $0x40] sm:$0xff]   ;;  %v2261_v32 = vld [vmem:[#allocation2 + $0x70] ss:$8 sps:$4 sm:$0xff]   ;;  %s2385_s26 = scalar_lea.vmem %s2915_s11, 128 }
  0x2e   : > { %2099 = vmatprep.subr.bf16.mxu1 %v2454_v0  ;;  %v2263_v33 = vld [vmem:[#allocation2 + $0x74] ss:$8 sps:$4 sm:$0xff]   ;;  %v2266_v34 = vld [vmem:[#allocation2 + $0x64] ss:$8 sps:$4 sm:$0xff]   ;;  %v2264_v35 = vld [vmem:[#allocation2 + $0x60] ss:$8 sps:$4 sm:$0xff]   ;;  %p2386_p8 = scmp.ne.s32.totalorder %s2915_s11, %s2385_s26 }
  0x2f   : > { %s376_s20 = scalar_lea.vmem %s2973_s0, %s1788_s27  ;;  %2088 = vmatpush3.bf16.msra.mxu0 %v2243_v5  ;;  %v2269_v36 = vld [vmem:[#allocation2 + $0x54] ss:$8 sps:$4 sm:$0xff]   ;;  %v2267_v37 = vld [vmem:[#allocation2 + $0x50] ss:$8 sps:$4 sm:$0xff]   ;;  %v2272_v38 = vld [vmem:[#allocation2 + $0x44] ss:$8 sps:$4 sm:$0xff]  }
  0x30   : > { %2089 = vmatprep.subr.bf16.mxu0 %v2454_v0  ;;  %v2619_v10 = vld [vmem:[%s376_s20] sm:$0xf]  ;;  %v2275_v40 = vld [vmem:[#allocation2 + $0x34] ss:$8 sps:$4 sm:$0xff]   ;;  %v2273_v41 = vld [vmem:[#allocation2 + $0x30] ss:$8 sps:$4 sm:$0xff]   ;;  %p2387_p9 = pnand %p2386_p8, %p2552_p5 }
  0x31   : > { %2100 = vmatpush3.bf16.msra.mxu1 %v2247_v9  ;;  %v2270_v39 = vld [vmem:[#allocation2 + $0x40] ss:$8 sps:$4 sm:$0xff]   ;;  %v2278_v42 = vld [vmem:[#allocation2 + $0x24] ss:$8 sps:$4 sm:$0xff]   ;;  %v2281_v44 = vld [vmem:[#allocation2 + $0x14] ss:$8 sps:$4 sm:$0xff]  }
  0x32   : > { %2101 = vmatprep.subr.bf16.mxu1 %v2454_v0  ;;  %v2276_v43 = vld [vmem:[#allocation2 + $0x20] ss:$8 sps:$4 sm:$0xff]   ;;  %v2279_v45 = vld [vmem:[#allocation2 + $0x10] ss:$8 sps:$4 sm:$0xff]   ;;  %v2284_v54 = vld [vmem:[#allocation2 + $0x4] ss:$8 sps:$4 sm:$0xff]   ;;  %p2388_p10 = pneg %p2387_p9 }
  0x33   : > { %2090 = vmatpush3.bf16.msra.mxu0 %v2244_v8  ;;  %v1795_v46 = vld [vmem:[%s2962_s4] ss:$0 sm:$0xff]  ;;  %v2285_v56 = vld [vmem:[%s2965_s7 + $0x78] sm:$0xff]   ;;  %v2287_v58 = vld [vmem:[%s2965_s7 + $0x70] sm:$0xff]   ;;  %s1994_s27 = sshll.u32 %s2535_s17, 7  ;;  %s1666_s17 = scalar_lea.sflag [#allocation4], %s364_s25 }
  0x34   : > { %2115 = vmatprep.subr.bf16.mxu0 %v2454_v0  ;;  %v2282_v55 = vld [vmem:[#allocation2] ss:$8 sps:$4 sm:$0xff]   ;;  %v2286_v57 = vld [vmem:[%s2965_s7 + $0x38] sm:$0xff]   ;;  %v2288_v59 = vld [vmem:[%s2965_s7 + $0x30] sm:$0xff]   ;;  %s2913_s20 = scalar_lea.hbm %s2967_s9, %s1994_s27  ;;  %s2389_s0 = sshll.u32 %s2458_s29, 4  ;;  %s2390_s0 = int_to_ptr.vmem [resolvable:$false] %s2389_s0 }
  0x35   : > { %2102 = vmatpush3.bf16.msra.mxu1 %v2248_v11  ;;  %v2289_v60 = vld [vmem:[%s2965_s7 + $0x68] sm:$0xff]   ;;  %v2291_v62 = vld [vmem:[%s2965_s7 + $0x60] sm:$0xff]   ;;  %v2293_v3 = vld [vmem:[%s2965_s7 + $0x58] sm:$0xff]   ;;  %s2391_s12 = scalar_lea.vmem %s2390_s0, 256  ;;  %p2392_p11 = scmp.lt.s32.totalorder %s2915_s11, %s2390_s0 }
  0x36   : > { %2092 = vmatmul.mubr.msk.bf16.vlgmr.msra.gmra.mxu0 %vm411_vm2, %v2619_v10  ;;  %2103 = vmatprep.subr.bf16.mxu1 %v2454_v0  ;;  %v2290_v61 = vld [vmem:[%s2965_s7 + $0x28] sm:$0xff]   ;;  %v2292_v63 = vld [vmem:[%s2965_s7 + $0x20] sm:$0xff]   ;;  %v2294_v4 = vld [vmem:[%s2965_s7 + $0x18] sm:$0xff]   ;;  %p2393_p12 = scmp.lt.s32.totalorder %s2391_s12, %s2385_s26 }
  0x37   : > { %2131 = vmatprep.mubr.msk.bf16.mxu0 %vm2455_vm0, %v2454_v0  ;;  %2116 = vmatpush3.bf16.msra.mxu0 %v2253_v16  ;;  %v2295_v5 = vld [vmem:[%s2965_s7 + $0x50] sm:$0xff]   ;;  %v1821_v7 = vld [vmem:[%s2962_s4 + $0x1] ss:$0 sm:$0xff]  ;;  %v2242_v8 = vld [vmem:[%s2959_s1 + $0x24] ss:$0 sps:$4 sm:$0x11]  }
  0x38   : > { %2117 = vmatprep.subr.bf16.mxu0 %v2454_v0  ;;  %v2296_v6 = vld [vmem:[%s2965_s7 + $0x10] sm:$0xff]   ;;  %p2394_p13 = por %p2393_p12, %p2392_p11 }
  0x39   : > { %2104 = vmatpush3.bf16.msra.mxu1 %v2249_v12 }
  0x3a   : > { %2105 = vmatprep.subr.bf16.mxu1 %v2454_v0  ;;  %p2395_p0 = pnand %p2394_p13, %p2388_p10 }
  0x3b   : > { %2118 = vmatpush3.bf16.msra.mxu0 %v2254_v17 }
  0x3c   : > { %2119 = vmatprep.subr.bf16.mxu0 %v2454_v0 }
  0x3d   : > { %2106 = vmatpush3.bf16.msra.mxu1 %v2250_v13 }
  0x3e   : > { %2107 = vmatprep.subr.bf16.mxu1 %v2454_v0 }
  0x3f   : > { %2120 = vmatpush3.bf16.msra.mxu0 %v2255_v18  ;;  %v2297_v18 = vld [vmem:[%s2965_s7 + $0x48] sm:$0xff]  }
  0x40   : > { %2121 = vmatprep.subr.bf16.mxu0 %v2454_v0 }
  0x41   : > { %2108 = vmatpush3.bf16.msra.mxu1 %v2251_v14  ;;  %v1052_v14 = vand.u32 %v2242_v8, %v2588_v2  ;;  %v2299_v2 = vld [vmem:[%s2965_s7 + $0x40] sm:$0xff]   ;;  %v2317_v8 = vld [vmem:[%s2961_s3 + $0xc8] sm:$0xff]  }
  0x42   : > { %2109 = vmatprep.subr.bf16.mxu1 %v2454_v0 }
  0x43   : > { %2122 = vmatpush3.bf16.msra.mxu0 %v2256_v19  ;;  %v2298_v19 = vld [vmem:[%s2965_s7 + $0x8] sm:$0xff]  }
  0x44   : > { %2123 = vmatprep.subr.bf16.mxu0 %v2454_v0 }
  0x45   : > { %2110 = vmatpush3.bf16.msra.mxu1 %v2252_v15 }
  0x46   : > { %799 = vmatprep.subr.bf16.mxu1 %v2263_v33 }
  0x47   : > { %2124 = vmatpush3.bf16.msra.mxu0 %v2257_v20  ;;  %v2300_v20 = vld [vmem:[%s2965_s7] sm:$0xff]  }
  0x48   : > { %2125 = vmatprep.subr.bf16.mxu0 %v2454_v0 }
  0x4b   : > { %2126 = vmatpush3.bf16.msra.mxu0 %v2258_v21  ;;  %v709_v21 = vlaneseq }
  0x4c   : > { %2127 = vmatprep.subr.bf16.mxu0 %v2454_v0 }
  0x4f   : > { %2128 = vmatpush3.bf16.msra.mxu0 %v2259_v30 }
  0x50   : > { %2129 = vmatprep.subr.bf16.mxu0 %v2454_v0 }
  0x53   : > { %2130 = vmatpush3.bf16.msra.mxu0 %v2260_v31 }
  0x54   : > { %2019 = vmatprep.subr.bf16.mxu0 %v2285_v56  ;;  %v2312_v56 = vld [vmem:[%s2961_s3 + $0xf0] sm:$0xff]  }
  0xf6   : > { %v455_v23 = vpop.f32.mrf.mxu0 }
  0xf7   : > { %v456_v24 = vadd.f32 %v1790_v22, %v455_v23  ;;  %v2745_v22 = vshrl.u32 %v709_v21, 7  ;;  %v2337_v21 = vld [vmem:[#allocation2 + $0x90] ss:$8 sps:$4 sm:$0xff]  }
  0xf8   : > { %v2093_v25 = vpop.f32.mrf.mxu0 }
  0xf9   : > { %v461_v26 = vmax.f32 %v456_v24, 0.0  ;;  %v711_v23 = vsub.s32 0, %v2745_v22  ;;  %v707_v24 = vld [vmem:[%s2964_s6] sm:$0x3]  ;;  %v715_v25 = vsub.s32 1, %v2745_v22 }
  0xfa   : > { %v458_v27 = vpop.f32.mrf.mxu0 }
  0xfb   : > { %v462_v28 = vpack.c.bf16 %v461_v26, %v461_v26  ;;  %v712_v26 = vrot.slane %v707_v24, %v711_v23  ;;  %v716_v27 = vrot.slane %v707_v24, %v715_v25  ;;  %v1891_v24 = vld [vmem:[%s2962_s4 + $0x2] ss:$0 sm:$0xff] }
  0xfc   : > { %v2094_v29 = vpop.f32.mrf.mxu0 }
  0xfd   : > { %2112 = vmatmul.mubr.bf16.vlgmr.msra.gmra.mxu1 %v462_v28 }
  0xfe   : > { %831 = vmatprep.mubr.bf16.mxu1 %v2456_v1  ;;  %800 = vmatpush1.bf16.msra.mxu1 %v2261_v32 }
  0xff   : > { %801 = vmatprep.subr.bf16.mxu1 %v2266_v34 }
 0x102   : > { %802 = vmatpush1.bf16.msra.mxu1 %v2264_v35 }
 0x103   : > { %803 = vmatprep.subr.bf16.mxu1 %v2269_v36  ;;  %v2301_v36 = vld [vmem:[%s2959_s1 + $0x1c] sm:$0xff]  }
 0x106   : > { %804 = vmatpush1.bf16.msra.mxu1 %v2267_v37  ;;  %v2302_v37 = vld [vmem:[%s2959_s1 + $0x14] sm:$0xff]  }
 0x107   : > { %805 = vmatprep.subr.bf16.mxu1 %v2272_v38  ;;  %v2303_v38 = vld [vmem:[%s2961_s3 + $0xb8] sm:$0xff]  }
 0x10a   : > { %806 = vmatpush1.bf16.msra.mxu1 %v2270_v39  ;;  %v2304_v39 = vld [vmem:[%s2961_s3 + $0xb0] sm:$0xff]  }
 0x10b   : > { %807 = vmatprep.subr.bf16.mxu1 %v2275_v40  ;;  %v2305_v40 = vld [vmem:[%s2961_s3 + $0xa8] sm:$0xff]  }
 0x10e   : > { %808 = vmatpush1.bf16.msra.mxu1 %v2273_v41  ;;  %v2306_v41 = vld [vmem:[%s2961_s3 + $0xa0] sm:$0xff]  }
 0x10f   : > { %809 = vmatprep.subr.bf16.mxu1 %v2278_v42  ;;  %v2307_v42 = vld [vmem:[%s2961_s3 + $0x98] sm:$0xff]  }
 0x112   : > { %810 = vmatpush1.bf16.msra.mxu1 %v2276_v43  ;;  %v2308_v43 = vld [vmem:[%s2961_s3 + $0x90] sm:$0xff]  }
 0x113   : > { %811 = vmatprep.subr.bf16.mxu1 %v2281_v44 }
 0x116   : > { %812 = vmatpush1.bf16.msra.mxu1 %v2279_v45  ;;  %v1846_v45 = vld [vmem:[%s2966_s8] ss:$0 sm:$0xff] }
 0x117   : > { %813 = vmatprep.subr.bf16.mxu1 %v2284_v54  ;;  %v2309_v54 = vld [vmem:[%s2961_s3 + $0x88] sm:$0xff]  }
 0x11a   : > { %814 = vmatpush1.bf16.msra.mxu1 %v2282_v55  ;;  %v2311_v55 = vld [vmem:[%s2961_s3 + $0xf8] sm:$0xff]  }
 0x11b   : > { %2135 = vmatprep.subr.bf16.mxu1 %v2454_v0 }
 0x1bd   : > { %v568_v47 = vpop.f32.mrf.mxu1 }
 0x1be   : > { %v569_v48 = vadd.f32 %v1795_v46, %v568_v47  ;;  %v383_v47 = vunpack.c.l.bf16 %v2619_v10  ;;  %v2310_v10 = vld [vmem:[%s2961_s3 + $0x80] sm:$0xff]  }
 0x1bf   : > { %v2113_v49 = vpop.f32.mrf.mxu1 }
 0x1c0   : > { %v574_v50 = vmax.f32 %v569_v48, 0.0 }
 0x1c1   : > { %v571_v51 = vpop.f32.mrf.mxu1 }
 0x1c2   : > { %v575_v52 = vpack.c.bf16 %v574_v50, %v574_v50 }
 0x1c3   : > { %v2114_v53 = vpop.f32.mrf.mxu1 }
 0x1c4   : > { %2132 = vmatmul.mubr.bf16.vlgmr.msra.gmra.mxu0 %v575_v52 }
 0x1c5   : > { %2020 = vmatpush3.bf16.msra.mxu0 %v2286_v57  ;;  %v2313_v57 = vld [vmem:[%s2961_s3 + $0xe8] sm:$0xff]  }
 0x1c6   : > { %2021 = vmatprep.subr.bf16.mxu0 %v2287_v58  ;;  %v2314_v58 = vld [vmem:[%s2961_s3 + $0xe0] sm:$0xff]  }
 0x1c9   : > { %2022 = vmatpush3.bf16.msra.mxu0 %v2288_v59  ;;  %v2315_v59 = vld [vmem:[%s2961_s3 + $0xd8] sm:$0xff]  }
 0x1ca   : > { %2023 = vmatprep.subr.bf16.mxu0 %v2289_v60  ;;  %v2316_v60 = vld [vmem:[%s2961_s3 + $0xd0] sm:$0xff]  }
 0x1cd   : > { %2024 = vmatpush3.bf16.msra.mxu0 %v2290_v61  ;;  %v1869_v61 = vld [vmem:[%s2960_s2 + $0x1] ss:$0 sm:$0xff] }
 0x1ce   : > { %2025 = vmatprep.subr.bf16.mxu0 %v2291_v62 }
 0x1d1   : > { %2026 = vmatpush3.bf16.msra.mxu0 %v2292_v63 }
 0x1d2   : > { %2027 = vmatprep.subr.bf16.mxu0 %v2293_v3 }
 0x1d5   : > { %2028 = vmatpush3.bf16.msra.mxu0 %v2294_v4 }
 0x1d6   : > { %2029 = vmatprep.subr.bf16.mxu0 %v2295_v5 }
 0x1d9   : > { %2030 = vmatpush3.bf16.msra.mxu0 %v2296_v6 }
 0x1da   : > { %2031 = vmatprep.subr.bf16.mxu0 %v2297_v18  ;;  %v2331_v18 = vld [vmem:[#allocation2 + $0xb0] ss:$8 sps:$4 sm:$0xff]  }
 0x1dd   : > { %2032 = vmatpush3.bf16.msra.mxu0 %v2298_v19  ;;  %v2336_v19 = vld [vmem:[#allocation2 + $0xa4] ss:$8 sps:$4 sm:$0xff]  }
 0x1de   : > { %2033 = vmatprep.subr.bf16.mxu0 %v2299_v2  ;;  %v2334_v2 = vld [vmem:[#allocation2 + $0xa0] ss:$8 sps:$4 sm:$0xff]  }
 0x1e1   : > { %2034 = vmatpush3.bf16.msra.mxu0 %v2300_v20  ;;  %v2339_v20 = vld [vmem:[#allocation2 + $0x94] ss:$8 sps:$4 sm:$0xff]  }
 0x1e2   : > { %2145 = vmatprep.subr.bf16.mxu0 %v2454_v0 }
 0x284   : > { %v683_v9 = vpop.f32.mrf.mxu0 }
 0x285   : > { %v684_v11 = vadd.f32 %v1821_v7, %v683_v9  ;;  %v2318_v9 = vld [vmem:[%s2961_s3 + $0xc0] sm:$0xff]  }
 0x286   : > { %v2133_v12 = vpop.f32.mrf.mxu0 }
 0x287   : > { %v689_v13 = vmax.f32 %v684_v11, 0.0  ;;  %v2319_v11 = vld [vmem:[#allocation2 + $0xf0] ss:$8 sps:$4 sm:$0xff]   ;;  %v2321_v12 = vld [vmem:[#allocation2 + $0xf4] ss:$8 sps:$4 sm:$0xff]  }
 0x288   : > { %v686_v15 = vpop.f32.mrf.mxu0 }
 0x289   : > { %v690_v16 = vpack.c.bf16 %v689_v13, %v689_v13  ;;  %v2324_v13 = vld [vmem:[#allocation2 + $0xe4] ss:$8 sps:$4 sm:$0xff]   ;;  %v2325_v15 = vld [vmem:[#allocation2 + $0xd0] ss:$8 sps:$4 sm:$0xff]  }
 0x28a   : > { %v2134_v17 = vpop.f32.mrf.mxu0 }
 0x28b   : > { %832 = vmatmul.mubr.bf16.vlgmr.msra.gmra.mxu1 %v690_v16  ;;  %v2330_v16 = vld [vmem:[#allocation2 + $0xc4] ss:$8 sps:$4 sm:$0xff]   ;;  %v2328_v17 = vld [vmem:[#allocation2 + $0xc0] ss:$8 sps:$4 sm:$0xff]  }
 0x28c   : > { %2136 = vmatpush3.bf16.msra.mxu1 %v1052_v14  ;;  %2141 = vmatprep.mubr.msk.bf16.mxu1 %vm2455_vm0, %v2454_v0  ;;  %v2322_v14 = vld [vmem:[#allocation2 + $0xe0] ss:$8 sps:$4 sm:$0xff]  }
 0x28d   : > { %2137 = vmatprep.subr.bf16.mxu1 %v2454_v0 }
 0x290   : > { %2138 = vmatpush3.bf16.msra.mxu1 %v2301_v36  ;;  %v2344_v36 = vld [vmem:[%s2965_s7 + $0xb8] sm:$0xff]  }
 0x291   : > { %2139 = vmatprep.subr.bf16.mxu1 %v2454_v0 }
 0x294   : > { %2140 = vmatpush3.bf16.msra.mxu1 %v2302_v37  ;;  %v2345_v37 = vld [vmem:[%s2965_s7 + $0xf0] sm:$0xff]  }
 0x295   : > { %2165 = vmatprep.subr.bf16.mxu1 %v2454_v0 }
 0x34b   : > { %v833_v28 = vpop.f32.mrf.mxu1 }
 0x34c   : > { %v834_v29 = vadd.f32 %v833_v28, %v712_v26 }
 0x34d   : > { %v835_v30 = vpop.f32.mrf.mxu1 }
 0x34e   : > { %v836_v31 = vadd.f32 %v835_v30, %v716_v27  ;;  %v840_v34 = vpack.c.bf16 %v834_v29, %v834_v29 }
 0x34f   : > { %v837_v32 = vpop.f32.mrf.mxu1 }
 0x350   : > { %v841_v33 = vpack.c.bf16 %v836_v31, %v836_v31 }
 0x351   : > { %v838_v35 = vpop.f32.mrf.mxu1 }
 0x352   : > { %1009 = vmatprep.mubr.bf16.mxu0 %v841_v33  ;;  %v2342_v33 = vld [vmem:[#allocation2 + $0x84] ss:$8 sps:$4 sm:$0xff]   ;;  %v2343_v35 = vld [vmem:[%s2965_s7 + $0xf8] sm:$0xff]  }
 0x353   : > { %1010 = vmatmul.mubr.bf16.vlgmr.msra.gmra.mxu0 %v840_v34  ;;  %v2340_v34 = vld [vmem:[#allocation2 + $0x80] ss:$8 sps:$4 sm:$0xff]  }
 0x354   : > { %2161 = vmatprep.mubr.msk.bf16.mxu0 %vm2455_vm0, %v2454_v0  ;;  %2146 = vmatpush3.bf16.msra.mxu0 %v2303_v38  ;;  %v2346_v38 = vld [vmem:[%s2965_s7 + $0xb0] sm:$0xff]  }
 0x355   : > { %2147 = vmatprep.subr.bf16.mxu0 %v2454_v0 }
 0x358   : > { %2148 = vmatpush3.bf16.msra.mxu0 %v2304_v39  ;;  %v2347_v39 = vld [vmem:[%s2965_s7 + $0xe8] sm:$0xff]  }
 0x359   : > { %2149 = vmatprep.subr.bf16.mxu0 %v2454_v0 }
 0x35c   : > { %2150 = vmatpush3.bf16.msra.mxu0 %v2305_v40  ;;  %v2348_v40 = vld [vmem:[%s2965_s7 + $0xa8] sm:$0xff]  }
 0x35d   : > { %2151 = vmatprep.subr.bf16.mxu0 %v2454_v0 }
 0x360   : > { %2152 = vmatpush3.bf16.msra.mxu0 %v2306_v41  ;;  %v2349_v41 = vld [vmem:[%s2965_s7 + $0xe0] sm:$0xff]  }
 0x361   : > { %2153 = vmatprep.subr.bf16.mxu0 %v2454_v0 }
 0x364   : > { %2154 = vmatpush3.bf16.msra.mxu0 %v2307_v42  ;;  %v2350_v42 = vld [vmem:[%s2965_s7 + $0xa0] sm:$0xff]  }
 0x365   : > { %2155 = vmatprep.subr.bf16.mxu0 %v2454_v0 }
 0x368   : > { %2156 = vmatpush3.bf16.msra.mxu0 %v2308_v43  ;;  %v2351_v43 = vld [vmem:[%s2965_s7 + $0xd8] sm:$0xff]  }
 0x369   : > { %2157 = vmatprep.subr.bf16.mxu0 %v2454_v0 }
 0x36c   : > { %2158 = vmatpush3.bf16.msra.mxu0 %v2309_v54 }
 0x36d   : > { %2159 = vmatprep.subr.bf16.mxu0 %v2454_v0 }
 0x370   : > { %2160 = vmatpush3.bf16.msra.mxu0 %v2310_v10 }
 0x371   : > { %1436 = vmatprep.subr.bf16.mxu0 %v2321_v12 }
 0x413   : > { %v2035_v44 = vpop.f32.mrf.mxu0 }
 0x415   : > { %v2036_v46 = vpop.f32.mrf.mxu0 }
 0x416   : > { %v2037_v48 = vadd.f32 %v2036_v46, %v2035_v44  ;;  %v2352_v44 = vld [vmem:[%s2965_s7 + $0x98] sm:$0xff]   ;;  %v2354_v46 = vld [vmem:[%s2965_s7 + $0x90] sm:$0xff]  }
 0x417   : > { %v2038_v49 = vpop.f32.mrf.mxu0 }
 0x418   : > { %v1012_v50 = vadd.f32 %v2037_v48, %v1846_v45  ;;  %v2353_v45 = vld [vmem:[%s2965_s7 + $0xd0] sm:$0xff]  }
 0x419   : > { %v2039_v51 = vpop.f32.mrf.mxu0 }
 0x41a   : > { %v2794_v52 = vadd.f32 %v1012_v50, %v383_v47  ;;  %v1917_v47 = vld [vmem:[%s2962_s4 + $0x3] ss:$0 sm:$0xff] }
 0x41c   : > { %v1018_v53 = vpack.c.bf16 %v2794_v52, %v2794_v52 }
 0x41e   : > { %2142 = vmatmul.mubr.msk.bf16.vlgmr.msra.gmra.mxu1 %vm411_vm2, %v1018_v53 }
 0x41f   : > { %2181 = vmatprep.mubr.msk.bf16.mxu1 %vm2455_vm0, %v2454_v0  ;;  %2166 = vmatpush3.bf16.msra.mxu1 %v2311_v55  ;;  %v2355_v55 = vld [vmem:[%s2965_s7 + $0xc8] sm:$0xff]  }
 0x420   : > { %2167 = vmatprep.subr.bf16.mxu1 %v2454_v0 }
 0x423   : > { %2168 = vmatpush3.bf16.msra.mxu1 %v2312_v56  ;;  %v2356_v56 = vld [vmem:[%s2965_s7 + $0x88] sm:$0xff]  }
 0x424   : > { %2169 = vmatprep.subr.bf16.mxu1 %v2454_v0 }
 0x427   : > { %2170 = vmatpush3.bf16.msra.mxu1 %v2313_v57  ;;  %v2357_v57 = vld [vmem:[%s2965_s7 + $0xc0] sm:$0xff]  }
 0x428   : > { %2171 = vmatprep.subr.bf16.mxu1 %v2454_v0 }
 0x42b   : > { %2172 = vmatpush3.bf16.msra.mxu1 %v2314_v58  ;;  %v2358_v58 = vld [vmem:[%s2965_s7 + $0x80] sm:$0xff]  }
 0x42c   : > { %2173 = vmatprep.subr.bf16.mxu1 %v2454_v0 }
 0x42f   : > { %2174 = vmatpush3.bf16.msra.mxu1 %v2315_v59  ;;  %v1926_v59 = vld [vmem:[%s2964_s6 + $0x2] sm:$0x3] }
 0x430   : > { %2175 = vmatprep.subr.bf16.mxu1 %v2454_v0 }
 0x433   : > { %2176 = vmatpush3.bf16.msra.mxu1 %v2316_v60  ;;  %v1349_v60 = vrot.slane %v1926_v59, %v711_v23  ;;  %v1976_v23 = vld [vmem:[%s2966_s8 + $0x1] ss:$0 sm:$0xff] }
 0x434   : > { %2177 = vmatprep.subr.bf16.mxu1 %v2454_v0 }
 0x437   : > { %2178 = vmatpush3.bf16.msra.mxu1 %v2317_v8 }
 0x438   : > { %2179 = vmatprep.subr.bf16.mxu1 %v2454_v0  ;;  %v2333_v0 = vld [vmem:[#allocation2 + $0xb4] ss:$8 sps:$4 sm:$0xff]  }
 0x43b   : > { %2180 = vmatpush3.bf16.msra.mxu1 %v2318_v9 }
 0x43c   : > { %2063 = vmatprep.subr.bf16.mxu1 %v2343_v35 }
 0x4de   : > { %v1088_v62 = vpop.f32.mrf.mxu1 }
 0x4df   : > { %v1089_v63 = vadd.f32 %v1869_v61, %v1088_v62  ;;  %v1353_v61 = vrot.slane %v1926_v59, %v715_v25 }
 0x4e0   : > { %v2143_v3 = vpop.f32.mrf.mxu1 }
 0x4e1   : > { %v1094_v4 = vmax.f32 %v1089_v63, 0.0 }
 0x4e2   : > { %v1091_v5 = vpop.f32.mrf.mxu1 }
 0x4e3   : > { %v1095_v6 = vpack.c.bf16 %v1094_v4, %v1094_v4 }
 0x4e4   : > { %v2144_v7 = vpop.f32.mrf.mxu1 }
 0x4e5   : > { %2162 = vmatmul.mubr.bf16.vlgmr.msra.gmra.mxu0 %v1095_v6 }
 0x4e6   : > { %1468 = vmatprep.mubr.bf16.mxu0 %v2456_v1  ;;  %1437 = vmatpush1.bf16.msra.mxu0 %v2319_v11  ;;  %v2327_v1 = vld [vmem:[#allocation2 + $0xd4] ss:$8 sps:$4 sm:$0xff]  }
 0x4e7   : > { %1438 = vmatprep.subr.bf16.mxu0 %v2324_v13 }
 0x4ea   : > { %1439 = vmatpush1.bf16.msra.mxu0 %v2322_v14 }
 0x4eb   : > { %1440 = vmatprep.subr.bf16.mxu0 %v2327_v1 }
 0x4ee   : > { %1441 = vmatpush1.bf16.msra.mxu0 %v2325_v15 }
 0x4ef   : > { %1442 = vmatprep.subr.bf16.mxu0 %v2330_v16 }
 0x4f2   : > { %1443 = vmatpush1.bf16.msra.mxu0 %v2328_v17 }
 0x4f3   : > { %1444 = vmatprep.subr.bf16.mxu0 %v2333_v0 }
 0x4f6   : > { %1445 = vmatpush1.bf16.msra.mxu0 %v2331_v18 }
 0x4f7   : > { %1446 = vmatprep.subr.bf16.mxu0 %v2336_v19 }
 0x4fa   : > { %1447 = vmatpush1.bf16.msra.mxu0 %v2334_v2 }
 0x4fb   : > { %1448 = vmatprep.subr.bf16.mxu0 %v2339_v20 }
 0x4fe   : > { %1449 = vmatpush1.bf16.msra.mxu0 %v2337_v21 }
 0x4ff   : > { %1450 = vmatprep.subr.bf16.mxu0 %v2342_v33 }
 0x502   : > { %1451 = vmatpush1.bf16.msra.mxu0 %v2340_v34 }
 0x5a5   : > { %v1203_v26 = vpop.f32.mrf.mxu0 }
 0x5a6   : > { %v1204_v27 = vadd.f32 %v1891_v24, %v1203_v26 }
 0x5a7   : > { %v2163_v28 = vpop.f32.mrf.mxu0 }
 0x5a8   : > { %v1209_v29 = vmax.f32 %v1204_v27, 0.0 }
 0x5a9   : > { %v1206_v30 = vpop.f32.mrf.mxu0 }
 0x5aa   : > { %v1210_v31 = vpack.c.bf16 %v1209_v29, %v1209_v29 }
 0x5ab   : > { %v2164_v32 = vpop.f32.mrf.mxu0 }
 0x5ac   : > { %2182 = vmatmul.mubr.bf16.vlgmr.msra.gmra.mxu1 %v1210_v31 }
 0x5ad   : > { %2064 = vmatpush3.bf16.msra.mxu1 %v2344_v36 }
 0x5ae   : > { %2065 = vmatprep.subr.bf16.mxu1 %v2345_v37 }
 0x5b1   : > { %2066 = vmatpush3.bf16.msra.mxu1 %v2346_v38 }
 0x5b2   : > { %2067 = vmatprep.subr.bf16.mxu1 %v2347_v39 }
 0x5b5   : > { %2068 = vmatpush3.bf16.msra.mxu1 %v2348_v40 }
 0x5b6   : > { %2069 = vmatprep.subr.bf16.mxu1 %v2349_v41 }
 0x5b9   : > { %2070 = vmatpush3.bf16.msra.mxu1 %v2350_v42 }
 0x5ba   : > { %2071 = vmatprep.subr.bf16.mxu1 %v2351_v43 }
 0x5bd   : > { %2072 = vmatpush3.bf16.msra.mxu1 %v2352_v44 }
 0x5be   : > { %2073 = vmatprep.subr.bf16.mxu1 %v2353_v45 }
 0x5c1   : > { %2074 = vmatpush3.bf16.msra.mxu1 %v2354_v46 }
 0x5c2   : > { %2075 = vmatprep.subr.bf16.mxu1 %v2355_v55 }
 0x5c5   : > { %2076 = vmatpush3.bf16.msra.mxu1 %v2356_v56 }
 0x5c6   : > { %2077 = vmatprep.subr.bf16.mxu1 %v2357_v57 }
 0x5c9   : > { %2078 = vmatpush3.bf16.msra.mxu1 %v2358_v58 }
 0x66c   : > { %v1318_v48 = vpop.f32.mrf.mxu1 }
 0x66d   : > { %v1319_v49 = vadd.f32 %v1917_v47, %v1318_v48 }
 0x66e   : > { %v2183_v50 = vpop.f32.mrf.mxu1 }
 0x66f   : > { %v1324_v51 = vmax.f32 %v1319_v49, 0.0 }
 0x670   : > { %v1321_v53 = vpop.f32.mrf.mxu1 }
 0x671   : > { %v1325_v54 = vpack.c.bf16 %v1324_v51, %v1324_v51 }
 0x672   : > { %v2184_v10 = vpop.f32.mrf.mxu1 }
 0x673   : > { %1469 = vmatmul.mubr.bf16.vlgmr.msra.gmra.mxu0 %v1325_v54 }
 0x733   : > { %v1470_v62 = vpop.f32.mrf.mxu0 }
 0x734   : > { %v1471_v63 = vadd.f32 %v1470_v62, %v1349_v60 }
 0x735   : > { %v1472_v3 = vpop.f32.mrf.mxu0 }
 0x736   : > { %v1473_v4 = vadd.f32 %v1472_v3, %v1353_v61  ;;  %v1477_v7 = vpack.c.bf16 %v1471_v63, %v1471_v63 }
 0x737   : > { %v1474_v5 = vpop.f32.mrf.mxu0 }
 0x738   : > { %v1478_v6 = vpack.c.bf16 %v1473_v4, %v1473_v4 }
 0x739   : > { %v1475_v8 = vpop.f32.mrf.mxu0 }
 0x73a   : > { %1648 = vmatprep.mubr.bf16.mxu1 %v1478_v6 }
 0x73b   : > { %1649 = vmatmul.mubr.bf16.vlgmr.msra.gmra.mxu1 %v1477_v7 }
 0x7fb   : > { %v2079_v9 = vpop.f32.mrf.mxu1 }
 0x7fd   : > { %v2080_v22 = vpop.f32.mrf.mxu1 }
 0x7fe   : > { %v2081_v25 = vadd.f32 %v2080_v22, %v2079_v9 }
 0x7ff   : > { %v2082_v11 = vpop.f32.mrf.mxu1 }
 0x800   : > { %v1651_v12 = vadd.f32 %v2081_v25, %v1976_v23 }
 0x801   : > { %v2083_v13 = vpop.f32.mrf.mxu1 }
 0x802   : > { %v1656_v14 = vadd.f32 %v1651_v12, %v2794_v52 }
 0x804   : > { %1660 = vrot.lane.b32.xlu0 %v1656_v14, %s2457_s28  ;;  %1658 = vst.msk [vmem:[%s366_s30] sm:$0xff] %vm1657_vm3, %v1656_v14 }
 0x805   : > { %2398 = shalt.err (!%p2395_p0)
}
 0x806   : > { %s2399_s27 = scalar_lea.hbm %s2913_s20, 128  ;;  %s2403_s18 = scalar_lea.hbm %s2967_s9, 256 }
 0x807   : > { %p2400_p1 = scmp.ne.s32.totalorder %s2913_s20, %s2399_s27  ;;  %p2404_p4 = scmp.lt.s32.totalorder %s2913_s20, %s2967_s9 }
 0x808   : > { %p2405_p7 = scmp.lt.s32.totalorder %s2403_s18, %s2399_s27 }
 0x809   : > { %p2401_p2 = pnand %p2400_p1, %p2552_p5 }
 0x80a   : > { %p2406_p6 = por %p2405_p7, %p2404_p4 }
 0x80b   : > { %p2402_p3 = pneg %p2401_p2 }
 0x80d   : > { %p2407_p8 = pnand %p2406_p6, %p2402_p3 }
 0x80f   : > { %2410 = shalt.err (!%p2407_p8)
}
 0x810   : > { %2189 = dma.vmem_to_hbm [thread:$0]  (%p2552_p5), %s2915_s11, 128, %s2913_s20, %s1666_s17   ;;  %vm1663_vm4 = vcmask 7168  }
 0x811   : > { %s1789_s0 = sshll.u32 %s2594_s21, 3 }
 0x812   : > { %s380_s25 = scalar_lea.vmem %s2968_s10, %s1789_s0 }
 0x876   : > { %v1661_v52 = vpop.permute.xlu0 %1660 }
 0x877   : > { %1664 = vst.msk [vmem:[%s380_s25] sm:$0xff] %vm1663_vm4, %v1661_v52 }
 0x878 PF: > { %p2201_p9 = scmp.ge.s32.totalorder %s2449_s16, 2  ;;  %s1698_s27 = sand.u32 1, %s2437_s13  }
 0x879   : > { %p2974_p10 = scmp.ne.s32.totalorder %s2971_s24, 0  ;;  %s1699_s23 = scalar_lea.sflag [#allocation4], %s1698_s27 }
 0x87b   : > { %p2196_p11 = pnand %p2201_p9, %p2974_p10 }
 0x87d   : > { %p2197_p12 = pneg %p2196_p11 }
 0x87f   : > { %2432 = dma.done.wait (%p2197_p12), %s1699_s23, 128  }
 0x880   : > { %2434 = vsyncadd (%p2197_p12), %s1699_s23, 4294967168  ;;  %p22_p5 = scmp.ge.s32.totalorder %s2539_s19, 4   ;;  %s2975_s13 = smov %s2441_s14 }
 0x881   : > { %s2976_s14 = smov %s2445_s15  ;;  %s2977_s15 = smov %s2550_s22 }
 0x882   : > { %s2978_s16 = smov %s2539_s19  ;;  %24 = sbr.rel (!%p22_p5) target bundleno = 6 (0x6), region = 120 }
 0x887   :  { %1711 = vsyncpa [#allocation3], 1 }
 0x888   :  { %1713 = vsyncpa [#allocation3 + $0x1], 1 }
 0x889   :  { %1714 = vsyncpa [#allocation4], 1 }
 0x88a   :  { %1716 = vsyncpa [#allocation4 + $0x1], 1 }

</bundles_post_ra>
